<compile_context>
chip_gen: v7x
topology: tpu7x:2x2x1
jax: 0.10.0
libtpu: 0.0.40
codegen_flags: <defaults>
</compile_context>

<pallas_src>
import math
import functools

import jax
import jax.numpy as jnp
from jax.experimental import pallas as pl
from jax.experimental.pallas import tpu as pltpu


def _layer_norm(z, gamma, beta, eps=1e-5):
    mu = jnp.mean(z, axis=-1, keepdims=True)
    var = jnp.mean((z - mu) ** 2, axis=-1, keepdims=True)
    return (z - mu) * jax.lax.rsqrt(var + eps) * gamma + beta


def encoder_layer_kernel(
    x_ref,
    wqkv_ref, bqkv_ref, wo_ref, bo_ref,
    w1_ref, b1_ref, w2_ref, b2_ref,
    g1_ref, be1_ref, g2_ref, be2_ref,
    *outs_and_scratch,
    num_heads, return_attn, activation,
):
    if return_attn:
        out_ref, attn_ref, q_s, k_s, v_s = outs_and_scratch
    else:
        out_ref, q_s, k_s, v_s = outs_and_scratch
        attn_ref = None

    L, D = x_ref.shape[1], x_ref.shape[2]
    H = num_heads
    dh = D // H
    TL = out_ref.shape[1]
    scale = 1.0 / math.sqrt(dh)
    bf16 = jnp.bfloat16

    qt = pl.program_id(1)

    # ---- once per batch element: fused QKV projection -> head-batched scratch ----
    @pl.when(qt == 0)
    def _():
        xb = x_ref[0].astype(bf16)                                   # (L, D)
        qkv = jnp.dot(xb, wqkv_ref[...],
                      preferred_element_type=jnp.float32) + bqkv_ref[...]   # (L, 3D) f32
        q2 = (qkv[:, :D] * scale).reshape(L, H, dh)
        k2 = qkv[:, D:2 * D].reshape(L, H, dh)
        v2 = qkv[:, 2 * D:].reshape(L, H, dh)
        # (L, H, dh) -> (H, L, dh): heads become the batch dim for the MXU einsums.
        q_s[...] = pltpu.einshape("lhd->hld", q2).astype(bf16)
        k_s[...] = pltpu.einshape("lhd->hld", k2).astype(bf16)
        v_s[...] = pltpu.einshape("lhd->hld", v2).astype(bf16)

    # ---- per query tile: attention (full softmax over L, K/V resident in VMEM) ----
    row0 = pl.multiple_of(qt * TL, TL)
    x_tile = x_ref[0, pl.ds(row0, TL), :]                            # (TL, D) f32
    qh = q_s[:, pl.ds(row0, TL), :]                                  # (H, TL, dh) bf16

    s = jnp.einsum("hqd,hkd->hqk", qh, k_s[...],
                   preferred_element_type=jnp.float32)               # (H, TL, L) f32
    m = jnp.max(s, axis=-1, keepdims=True)
    e = jnp.exp(s - m)
    inv = pl.reciprocal(jnp.sum(e, axis=-1, keepdims=True), approx=True)

    if attn_ref is not None:
        p = e * inv                                                  # normalized weights
        attn_ref[0] = p.astype(attn_ref.dtype)
        ctx = jnp.einsum("hqk,hkd->hqd", p.astype(bf16), v_s[...],
                         preferred_element_type=jnp.float32)         # (H, TL, dh) f32
    else:
        ctx = jnp.einsum("hqk,hkd->hqd", e.astype(bf16), v_s[...],
                         preferred_element_type=jnp.float32) * inv

    ctx2 = pltpu.einshape("hqd->qhd", ctx).reshape(TL, D)            # back to (TL, D)
    new_x = jnp.dot(ctx2.astype(bf16), wo_ref[...],
                    preferred_element_type=jnp.float32) + bo_ref[...]

    # ---- residual + LayerNorm1 ----
    x1 = _layer_norm(x_tile + new_x, g1_ref[...], be1_ref[...])

    # ---- feed-forward (kernel_size=1 convs == pointwise linears) ----
    y = jnp.dot(x1.astype(bf16), w1_ref[...],
                preferred_element_type=jnp.float32) + b1_ref[...]
    y = jnp.maximum(y, 0.0) if activation == "relu" else jax.nn.gelu(y, approximate=True)
    y = jnp.dot(y.astype(bf16), w2_ref[...],
                preferred_element_type=jnp.float32) + b2_ref[...]

    # ---- residual + LayerNorm2 ----
    out_ref[0] = _layer_norm(x1 + y, g2_ref[...], be2_ref[...]).astype(out_ref.dtype)


def encoder_layer(x, params, num_heads, *, q_tile=128, return_attn=True,
                  attn_dtype=jnp.float32, activation="relu"):
    """x: (B, L, D) float32. Returns (out (B,L,D), attn (B,H,L,L)) [attn=None if skipped]."""
    B, L, D = x.shape
    H = num_heads
    assert D % H == 0, "model_dim must be divisible by num_heads"
    dh = D // H

    TL = min(q_tile, L)
    if TL < L:
        assert L % TL == 0 and TL % 8 == 0, "q_tile must divide L and be a multiple of 8"
    T = L // TL
    FF = params["w1"].shape[1]

    full = lambda shape: pl.BlockSpec(shape, lambda b, t: (0,) * len(shape))
    in_specs = [
        pl.BlockSpec((1, L, D), lambda b, t: (b, 0, 0)),   # x (full seq per batch element)
        full((D, 3 * D)), full((1, 3 * D)),                # fused Wqkv, bqkv
        full((D, D)), full((1, D)),                        # Wo, bo
        full((D, FF)), full((1, FF)),                      # W1, b1   (conv1, k=1)
        full((FF, D)), full((1, D)),                       # W2, b2   (conv2, k=1)
        full((1, D)), full((1, D)),                        # gamma1, beta1
        full((1, D)), full((1, D)),                        # gamma2, beta2
    ]

    out_specs = [pl.BlockSpec((1, TL, D), lambda b, t: (b, t, 0))]
    out_shapes = [jax.ShapeDtypeStruct((B, L, D), x.dtype)]
    if return_attn:
        out_specs.append(pl.BlockSpec((1, H, TL, L), lambda b, t: (b, 0, t, 0)))
        out_shapes.append(jax.ShapeDtypeStruct((B, H, L, L), attn_dtype))

    # head-batched bf16 Q/K/V scratch, persistent across the query-tile (arbitrary) axis
    scratch_shapes = [pltpu.VMEM((H, L, dh), jnp.bfloat16)] * 3

    kernel = functools.partial(encoder_layer_kernel, num_heads=H,
                               return_attn=return_attn, activation=activation)

    result = pl.pallas_call(
        kernel,
        out_shape=tuple(out_shapes),
        grid_spec=pltpu.PrefetchScalarGridSpec(
            num_scalar_prefetch=0,
            grid=(B, T),
            in_specs=in_specs,
            out_specs=tuple(out_specs),
            scratch_shapes=scratch_shapes,
        ),
        compiler_params=pltpu.CompilerParams(
            # batch axis feeds both TensorCores on megacore parts; the query-tile axis
            # must stay sequential because K/V scratch is reused across tiles of one b.
            dimension_semantics=("parallel", "arbitrary"),
            # explicit scoped-VMEM budget (raise toward 64-128 MiB on v5e/v6e for bigger tiles;
            # keep <= 64 MiB physical on v7x).
            vmem_limit_bytes=32 * 1024 * 1024,
        ),
    )(
        x,
        params["wqkv"], params["bqkv"], params["wo"], params["bo"],
        params["w1"], params["b1"], params["w2"], params["b2"],
        params["g1"], params["be1"], params["g2"], params["be2"],
    )

    if return_attn:
        return result
    return result[0], None


def reference_encoder_layer(x, params, num_heads):
    """Pure-JAX reference mirroring the kernel's numerics (bf16 MXU inputs, f32 accum)."""
    B, L, D = x.shape
    H = num_heads
    dh = D // H
    scale = 1.0 / math.sqrt(dh)
    bf16, f32 = jnp.bfloat16, jnp.float32

    xb = x.astype(bf16)
    qkv = jnp.einsum("bld,de->ble", xb, params["wqkv"],
                     preferred_element_type=f32) + params["bqkv"]
    q = (qkv[..., :D] * scale).reshape(B, L, H, dh).transpose(0, 2, 1, 3).astype(bf16)
    k = qkv[..., D:2 * D].reshape(B, L, H, dh).transpose(0, 2, 1, 3).astype(bf16)
    v = qkv[..., 2 * D:].reshape(B, L, H, dh).transpose(0, 2, 1, 3).astype(bf16)

    s = jnp.einsum("bhqd,bhkd->bhqk", q, k, preferred_element_type=f32)
    p = jax.nn.softmax(s, axis=-1)
    ctx = jnp.einsum("bhqk,bhkd->bhqd", p.astype(bf16), v, preferred_element_type=f32)
    ctx = ctx.transpose(0, 2, 1, 3).reshape(B, L, D).astype(bf16)
    new_x = jnp.einsum("bld,de->ble", ctx, params["wo"],
                       preferred_element_type=f32) + params["bo"]

    x1 = _layer_norm(x + new_x, params["g1"], params["be1"])
    y = jnp.einsum("bld,df->blf", x1.astype(bf16), params["w1"],
                   preferred_element_type=f32) + params["b1"]
    y = jnp.maximum(y, 0.0)
    y = jnp.einsum("blf,fd->bld", y.astype(bf16), params["w2"],
                   preferred_element_type=f32) + params["b2"]
    return _layer_norm(x1 + y, params["g2"], params["be2"]), p


def init_params(key, model_dim, ff_dim):
    D, FF = model_dim, ff_dim
    ks = jax.random.split(key, 12)
    f32, bf16 = jnp.float32, jnp.bfloat16
    s_d = 1.0 / math.sqrt(D)
    s_f = 1.0 / math.sqrt(FF)

    wq = jax.random.normal(ks[0], (D, D), f32) * s_d
    wk = jax.random.normal(ks[1], (D, D), f32) * s_d
    wv = jax.random.normal(ks[2], (D, D), f32) * s_d
    return {
        # fused QKV projection weight (D, 3D) in bf16 (MXU input dtype)
        "wqkv": jnp.concatenate([wq, wk, wv], axis=1).astype(bf16),
        "bqkv": jax.random.normal(ks[3], (1, 3 * D), f32) * 0.02,
        "wo": (jax.random.normal(ks[4], (D, D), f32) * s_d).astype(bf16),
        "bo": jax.random.normal(ks[5], (1, D), f32) * 0.02,
        # conv_layer_1: Conv1d(D -> FF, k=1) == linear (D, FF)
        "w1": (jax.random.normal(ks[6], (D, FF), f32) * s_d).astype(bf16),
        "b1": jax.random.normal(ks[7], (1, FF), f32) * 0.02,
        # conv_layer_2: Conv1d(FF -> D, k=1) == linear (FF, D)
        "w2": (jax.random.normal(ks[8], (FF, D), f32) * s_f).astype(bf16),
        "b2": jax.random.normal(ks[9], (1, D), f32) * 0.02,
        "g1": 1.0 + 0.1 * jax.random.normal(ks[10], (1, D), f32),
        "be1": 0.02 * jax.random.normal(ks[11], (1, D), f32),
        "g2": jnp.ones((1, D), f32),
        "be2": jnp.zeros((1, D), f32),
    }


if __name__ == "__main__":
    # Small demo shapes (production use: D multiple of 128, dh >= 128, q_tile ~128).
    B, L, D, H = 2, 32, 32, 4
    FF = 4 * D          # ff_dim defaults to 4 * model_dim
    Q_TILE = 16         # L is split into 2 query tiles -> grid (B, 2)

    key = jax.random.PRNGKey(0)
    kx, kp = jax.random.split(key)
    x = jax.random.normal(kx, (B, L, D), jnp.float32)
    params = init_params(kp, D, FF)

    out, attn = encoder_layer(x, params, num_heads=H, q_tile=Q_TILE, return_attn=True)
    out = jax.block_until_ready(out)
    attn = jax.block_until_ready(attn)

    ref_out, ref_attn = reference_encoder_layer(x, params, num_heads=H)
    assert out.shape == (B, L, D) and attn.shape == (B, H, L, L)
    assert jnp.allclose(out, ref_out, atol=2e-2, rtol=2e-2), "output mismatch"
    assert jnp.allclose(attn, ref_attn, atol=1e-2, rtol=1e-2), "attention mismatch"

    print("KERNEL_OK")
</pallas_src>

<mosaic_0001>
module attributes {stable_mosaic.version = 11 : i64} {
  func.func @encoder_layer_kernel(%arg0: i32, %arg1: i32, %arg2: memref<1x32x32xf32, #tpu.memory_space<vmem>>, %arg3: memref<32x96xbf16, #tpu.memory_space<vmem>>, %arg4: memref<1x96xf32, #tpu.memory_space<vmem>>, %arg5: memref<32x32xbf16, #tpu.memory_space<vmem>>, %arg6: memref<1x32xf32, #tpu.memory_space<vmem>>, %arg7: memref<32x128xbf16, #tpu.memory_space<vmem>>, %arg8: memref<1x128xf32, #tpu.memory_space<vmem>>, %arg9: memref<128x32xbf16, #tpu.memory_space<vmem>>, %arg10: memref<1x32xf32, #tpu.memory_space<vmem>>, %arg11: memref<1x32xf32, #tpu.memory_space<vmem>>, %arg12: memref<1x32xf32, #tpu.memory_space<vmem>>, %arg13: memref<1x32xf32, #tpu.memory_space<vmem>>, %arg14: memref<1x32xf32, #tpu.memory_space<vmem>>, %arg15: memref<1x16x32xf32, #tpu.memory_space<vmem>>, %arg16: memref<1x4x16x32xf32, #tpu.memory_space<vmem>>, %arg17: memref<4x32x8xbf16, #tpu.memory_space<vmem>>, %arg18: memref<4x32x8xbf16, #tpu.memory_space<vmem>>, %arg19: memref<4x32x8xbf16, #tpu.memory_space<vmem>>) attributes {dimension_semantics = [#tpu.dimension_semantics<parallel>, #tpu.dimension_semantics<arbitrary>], iteration_bounds = array<i64: 2, 2>, scalar_prefetch = 0 : i64, scratch_operands = 3 : i64, tpu.core_type = #tpu.core_type<tc>, window_params = [{transform_indices = @transform_0, window_bounds = array<i64: 1, 32, 32>}, {pipeline_mode = #tpu.pipeline_mode<synchronous>, transform_indices = @transform_1, window_bounds = array<i64: 32, 96>}, {pipeline_mode = #tpu.pipeline_mode<synchronous>, transform_indices = @transform_2, window_bounds = array<i64: 1, 96>}, {pipeline_mode = #tpu.pipeline_mode<synchronous>, transform_indices = @transform_3, window_bounds = array<i64: 32, 32>}, {pipeline_mode = #tpu.pipeline_mode<synchronous>, transform_indices = @transform_4, window_bounds = array<i64: 1, 32>}, {pipeline_mode = #tpu.pipeline_mode<synchronous>, transform_indices = @transform_5, window_bounds = array<i64: 32, 128>}, {pipeline_mode = #tpu.pipeline_mode<synchronous>, transform_indices = @transform_6, window_bounds = array<i64: 1, 128>}, {pipeline_mode = #tpu.pipeline_mode<synchronous>, transform_indices = @transform_7, window_bounds = array<i64: 128, 32>}, {pipeline_mode = #tpu.pipeline_mode<synchronous>, transform_indices = @transform_8, window_bounds = array<i64: 1, 32>}, {pipeline_mode = #tpu.pipeline_mode<synchronous>, transform_indices = @transform_9, window_bounds = array<i64: 1, 32>}, {pipeline_mode = #tpu.pipeline_mode<synchronous>, transform_indices = @transform_10, window_bounds = array<i64: 1, 32>}, {pipeline_mode = #tpu.pipeline_mode<synchronous>, transform_indices = @transform_11, window_bounds = array<i64: 1, 32>}, {pipeline_mode = #tpu.pipeline_mode<synchronous>, transform_indices = @transform_12, window_bounds = array<i64: 1, 32>}, {transform_indices = @transform_13, window_bounds = array<i64: 1, 16, 32>}, {transform_indices = @transform_14, window_bounds = array<i64: 1, 4, 16, 32>}]} {
    %c0_i32 = arith.constant 0 : i32
    %0 = arith.cmpi eq, %arg1, %c0_i32 : i32
    %1 = arith.extui %0 : i1 to i32
    %c0_i32_0 = arith.constant 0 : i32
    %2 = arith.cmpi ne, %1, %c0_i32_0 : i32
    scf.if %2 {
      %c0_54 = arith.constant 0 : index
      %c0_55 = arith.constant 0 : index
      %c0_56 = arith.constant 0 : index
      %103 = vector.load %arg2[%c0_54, %c0_55, %c0_56] : memref<1x32x32xf32, #tpu.memory_space<vmem>>, vector<1x32x32xf32>
      %104 = vector.shape_cast %103 : vector<1x32x32xf32> to vector<32x32xf32>
      %105 = arith.truncf %104 : vector<32x32xf32> to vector<32x32xbf16>
      %c0_57 = arith.constant 0 : index
      %c0_58 = arith.constant 0 : index
      %106 = vector.load %arg3[%c0_57, %c0_58] : memref<32x96xbf16, #tpu.memory_space<vmem>>, vector<32x96xbf16>
      %cst_59 = arith.constant dense<0.000000e+00> : vector<32x96xf32>
      %107 = tpu.matmul %105, %106, %cst_59 {dimension_numbers = #tpu.dot_dimension_numbers<[1], [0], [0], [1], [0, 0, 1, 1], [], []>} : vector<32x32xbf16>, vector<32x96xbf16>, vector<32x96xf32> -> vector<32x96xf32>
      %c0_60 = arith.constant 0 : index
      %c0_61 = arith.constant 0 : index
      %108 = vector.load %arg4[%c0_60, %c0_61] : memref<1x96xf32, #tpu.memory_space<vmem>>, vector<1x96xf32>
      %109 = vector.broadcast %108 : vector<1x96xf32> to vector<32x96xf32>
      %110 = arith.addf %107, %109 : vector<32x96xf32>
      %111 = vector.extract_strided_slice %110 {offsets = [0, 0], sizes = [32, 32], strides = [1, 1]} : vector<32x96xf32> to vector<32x32xf32>
      %cst_62 = arith.constant 0.353553385 : f32
      %112 = vector.broadcast %cst_62 : f32 to vector<32x32xf32>
      %113 = arith.mulf %111, %112 : vector<32x32xf32>
      %114 = vector.shape_cast %113 : vector<32x32xf32> to vector<32x4x8xf32>
      %115 = vector.extract_strided_slice %110 {offsets = [0, 32], sizes = [32, 32], strides = [1, 1]} : vector<32x96xf32> to vector<32x32xf32>
      %116 = vector.shape_cast %115 : vector<32x32xf32> to vector<32x4x8xf32>
      %117 = vector.extract_strided_slice %110 {offsets = [0, 64], sizes = [32, 32], strides = [1, 1]} : vector<32x96xf32> to vector<32x32xf32>
      %118 = vector.shape_cast %117 : vector<32x32xf32> to vector<32x4x8xf32>
      %119 = tpu.transpose %114, [1, 0, 2] : vector<32x4x8xf32> -> vector<4x32x8xf32>
      %120 = arith.truncf %119 : vector<4x32x8xf32> to vector<4x32x8xbf16>
      %c0_63 = arith.constant 0 : index
      %c0_64 = arith.constant 0 : index
      %c0_65 = arith.constant 0 : index
      %121 = vector.load %arg17[%c0_63, %c0_64, %c0_65] : memref<4x32x8xbf16, #tpu.memory_space<vmem>>, vector<4x32x8xbf16>
      tpu.vector_store %arg17[%c0_63, %c0_64, %c0_65], %120 {strides = array<i32>} : memref<4x32x8xbf16, #tpu.memory_space<vmem>>, vector<4x32x8xbf16>,
      %122 = tpu.transpose %116, [1, 0, 2] : vector<32x4x8xf32> -> vector<4x32x8xf32>
      %123 = arith.truncf %122 : vector<4x32x8xf32> to vector<4x32x8xbf16>
      %c0_66 = arith.constant 0 : index
      %c0_67 = arith.constant 0 : index
      %c0_68 = arith.constant 0 : index
      %124 = vector.load %arg18[%c0_66, %c0_67, %c0_68] : memref<4x32x8xbf16, #tpu.memory_space<vmem>>, vector<4x32x8xbf16>
      tpu.vector_store %arg18[%c0_66, %c0_67, %c0_68], %123 {strides = array<i32>} : memref<4x32x8xbf16, #tpu.memory_space<vmem>>, vector<4x32x8xbf16>,
      %125 = tpu.transpose %118, [1, 0, 2] : vector<32x4x8xf32> -> vector<4x32x8xf32>
      %126 = arith.truncf %125 : vector<4x32x8xf32> to vector<4x32x8xbf16>
      %c0_69 = arith.constant 0 : index
      %c0_70 = arith.constant 0 : index
      %c0_71 = arith.constant 0 : index
      %127 = vector.load %arg19[%c0_69, %c0_70, %c0_71] : memref<4x32x8xbf16, #tpu.memory_space<vmem>>, vector<4x32x8xbf16>
      tpu.vector_store %arg19[%c0_69, %c0_70, %c0_71], %126 {strides = array<i32>} : memref<4x32x8xbf16, #tpu.memory_space<vmem>>, vector<4x32x8xbf16>,
    } else {
    }
    %c16_i32 = arith.constant 16 : i32
    %3 = arith.muli %arg1, %c16_i32 : i32
    %4 = tpu.assume_multiple %3, 16 : i32
    %c0 = arith.constant 0 : index
    %5 = arith.index_cast %4 : i32 to index
    %c0_1 = arith.constant 0 : index
    %6 = vector.load %arg2[%c0, %5, %c0_1] : memref<1x32x32xf32, #tpu.memory_space<vmem>>, vector<1x16x32xf32>
    %7 = vector.shape_cast %6 : vector<1x16x32xf32> to vector<16x32xf32>
    %c0_2 = arith.constant 0 : index
    %8 = arith.index_cast %4 : i32 to index
    %c0_3 = arith.constant 0 : index
    %9 = vector.load %arg17[%c0_2, %8, %c0_3] : memref<4x32x8xbf16, #tpu.memory_space<vmem>>, vector<4x16x8xbf16>
    %c0_4 = arith.constant 0 : index
    %c0_5 = arith.constant 0 : index
    %c0_6 = arith.constant 0 : index
    %10 = vector.load %arg18[%c0_4, %c0_5, %c0_6] : memref<4x32x8xbf16, #tpu.memory_space<vmem>>, vector<4x32x8xbf16>
    "tpu.trace_start"() <{level = 10 : i32, message = "hqd,hkd->hqk"}> : () -> ()
    %cst = arith.constant dense<0.000000e+00> : vector<4x16x32xf32>
    %11 = tpu.matmul %9, %10, %cst {dimension_numbers = #tpu.dot_dimension_numbers<[2], [2], [1], [1], [0, 0, 0, 1, 1, 1], [0], [0]>} : vector<4x16x8xbf16>, vector<4x32x8xbf16>, vector<4x16x32xf32> -> vector<4x16x32xf32>
    "tpu.trace_stop"() : () -> ()
    %cst_7 = arith.constant dense<0xFF800000> : vector<4x16xf32>
    %12 = vector.multi_reduction <maximumf>, %11, %cst_7 [2] : vector<4x16x32xf32> to vector<4x16xf32>
    %13 = vector.shape_cast %12 : vector<4x16xf32> to vector<4x16x1xf32>
    %14 = vector.broadcast %13 : vector<4x16x1xf32> to vector<4x16x32xf32>
    %15 = arith.subf %11, %14 : vector<4x16x32xf32>
    %16 = math.exp %15 : vector<4x16x32xf32>
    %cst_8 = arith.constant dense<0.000000e+00> : vector<4x16xf32>
    %17 = vector.multi_reduction <add>, %16, %cst_8 [2] : vector<4x16x32xf32> to vector<4x16xf32>
    %18 = vector.shape_cast %17 : vector<4x16xf32> to vector<4x16x1xf32>
    %19 = tpu.reciprocal %18 {approx = true} : vector<4x16x1xf32> -> vector<4x16x1xf32>
    %20 = vector.broadcast %19 : vector<4x16x1xf32> to vector<4x16x32xf32>
    %21 = arith.mulf %16, %20 : vector<4x16x32xf32>
    %c0_9 = arith.constant 0 : index
    %c0_10 = arith.constant 0 : index
    %c0_11 = arith.constant 0 : index
    %c0_12 = arith.constant 0 : index
    %22 = vector.load %arg16[%c0_9, %c0_10, %c0_11, %c0_12] : memref<1x4x16x32xf32, #tpu.memory_space<vmem>>, vector<1x4x16x32xf32>
    %23 = vector.shape_cast %22 : vector<1x4x16x32xf32> to vector<4x16x32xf32>
    %24 = vector.shape_cast %21 : vector<4x16x32xf32> to vector<1x4x16x32xf32>
    tpu.vector_store %arg16[%c0_9, %c0_10, %c0_11, %c0_12], %24 {strides = array<i32>} : memref<1x4x16x32xf32, #tpu.memory_space<vmem>>, vector<1x4x16x32xf32>,
    %25 = arith.truncf %21 : vector<4x16x32xf32> to vector<4x16x32xbf16>
    %c0_13 = arith.constant 0 : index
    %c0_14 = arith.constant 0 : index
    %c0_15 = arith.constant 0 : index
    %26 = vector.load %arg19[%c0_13, %c0_14, %c0_15] : memref<4x32x8xbf16, #tpu.memory_space<vmem>>, vector<4x32x8xbf16>
    "tpu.trace_start"() <{level = 10 : i32, message = "hqk,hkd->hqd"}> : () -> ()
    %cst_16 = arith.constant dense<0.000000e+00> : vector<4x16x8xf32>
    %27 = tpu.matmul %25, %26, %cst_16 {dimension_numbers = #tpu.dot_dimension_numbers<[2], [1], [1], [2], [0, 0, 0, 1, 1, 2], [0], [0]>} : vector<4x16x32xbf16>, vector<4x32x8xbf16>, vector<4x16x8xf32> -> vector<4x16x8xf32>
    "tpu.trace_stop"() : () -> ()
    %28 = tpu.transpose %27, [1, 0, 2] : vector<4x16x8xf32> -> vector<16x4x8xf32>
    %29 = vector.shape_cast %28 : vector<16x4x8xf32> to vector<16x32xf32>
    %30 = arith.truncf %29 : vector<16x32xf32> to vector<16x32xbf16>
    %c0_17 = arith.constant 0 : index
    %c0_18 = arith.constant 0 : index
    %31 = vector.load %arg5[%c0_17, %c0_18] : memref<32x32xbf16, #tpu.memory_space<vmem>>, vector<32x32xbf16>
    %cst_19 = arith.constant dense<0.000000e+00> : vector<16x32xf32>
    %32 = tpu.matmul %30, %31, %cst_19 {dimension_numbers = #tpu.dot_dimension_numbers<[1], [0], [0], [1], [0, 0, 1, 1], [], []>} : vector<16x32xbf16>, vector<32x32xbf16>, vector<16x32xf32> -> vector<16x32xf32>
    %c0_20 = arith.constant 0 : index
    %c0_21 = arith.constant 0 : index
    %33 = vector.load %arg6[%c0_20, %c0_21] : memref<1x32xf32, #tpu.memory_space<vmem>>, vector<1x32xf32>
    %34 = vector.broadcast %33 : vector<1x32xf32> to vector<16x32xf32>
    %35 = arith.addf %32, %34 : vector<16x32xf32>
    %36 = arith.addf %7, %35 : vector<16x32xf32>
    %c0_22 = arith.constant 0 : index
    %c0_23 = arith.constant 0 : index
    %37 = vector.load %arg11[%c0_22, %c0_23] : memref<1x32xf32, #tpu.memory_space<vmem>>, vector<1x32xf32>
    %c0_24 = arith.constant 0 : index
    %c0_25 = arith.constant 0 : index
    %38 = vector.load %arg12[%c0_24, %c0_25] : memref<1x32xf32, #tpu.memory_space<vmem>>, vector<1x32xf32>
    %cst_26 = arith.constant dense<0.000000e+00> : vector<16xf32>
    %39 = vector.multi_reduction <add>, %36, %cst_26 [1] : vector<16x32xf32> to vector<16xf32>
    %40 = vector.shape_cast %39 : vector<16xf32> to vector<16x1xf32>
    %cst_27 = arith.constant 3.200000e+01 : f32
    %41 = vector.broadcast %cst_27 : f32 to vector<16x1xf32>
    %42 = arith.divf %40, %41 : vector<16x1xf32>
    %43 = vector.broadcast %42 : vector<16x1xf32> to vector<16x32xf32>
    %44 = arith.subf %36, %43 : vector<16x32xf32>
    %45 = arith.mulf %44, %44 : vector<16x32xf32>
    %cst_28 = arith.constant dense<0.000000e+00> : vector<16xf32>
    %46 = vector.multi_reduction <add>, %45, %cst_28 [1] : vector<16x32xf32> to vector<16xf32>
    %47 = vector.shape_cast %46 : vector<16xf32> to vector<16x1xf32>
    %cst_29 = arith.constant 3.200000e+01 : f32
    %48 = vector.broadcast %cst_29 : f32 to vector<16x1xf32>
    %49 = arith.divf %47, %48 : vector<16x1xf32>
    %50 = vector.broadcast %42 : vector<16x1xf32> to vector<16x32xf32>
    %51 = arith.subf %36, %50 : vector<16x32xf32>
    %cst_30 = arith.constant 9.99999974E-6 : f32
    %52 = vector.broadcast %cst_30 : f32 to vector<16x1xf32>
    %53 = arith.addf %49, %52 : vector<16x1xf32>
    %54 = math.rsqrt %53 : vector<16x1xf32>
    %55 = vector.broadcast %54 : vector<16x1xf32> to vector<16x32xf32>
    %56 = arith.mulf %51, %55 : vector<16x32xf32>
    %57 = vector.broadcast %37 : vector<1x32xf32> to vector<16x32xf32>
    %58 = arith.mulf %56, %57 : vector<16x32xf32>
    %59 = vector.broadcast %38 : vector<1x32xf32> to vector<16x32xf32>
    %60 = arith.addf %58, %59 : vector<16x32xf32>
    %61 = arith.truncf %60 : vector<16x32xf32> to vector<16x32xbf16>
    %c0_31 = arith.constant 0 : index
    %c0_32 = arith.constant 0 : index
    %62 = vector.load %arg7[%c0_31, %c0_32] : memref<32x128xbf16, #tpu.memory_space<vmem>>, vector<32x128xbf16>
    %cst_33 = arith.constant dense<0.000000e+00> : vector<16x128xf32>
    %63 = tpu.matmul %61, %62, %cst_33 {dimension_numbers = #tpu.dot_dimension_numbers<[1], [0], [0], [1], [0, 0, 1, 1], [], []>} : vector<16x32xbf16>, vector<32x128xbf16>, vector<16x128xf32> -> vector<16x128xf32>
    %c0_34 = arith.constant 0 : index
    %c0_35 = arith.constant 0 : index
    %64 = vector.load %arg8[%c0_34, %c0_35] : memref<1x128xf32, #tpu.memory_space<vmem>>, vector<1x128xf32>
    %65 = vector.broadcast %64 : vector<1x128xf32> to vector<16x128xf32>
    %66 = arith.addf %63, %65 : vector<16x128xf32>
    %cst_36 = arith.constant 0.000000e+00 : f32
    %67 = vector.broadcast %cst_36 : f32 to vector<16x128xf32>
    %68 = arith.maximumf %66, %67 : vector<16x128xf32>
    %69 = arith.truncf %68 : vector<16x128xf32> to vector<16x128xbf16>
    %c0_37 = arith.constant 0 : index
    %c0_38 = arith.constant 0 : index
    %70 = vector.load %arg9[%c0_37, %c0_38] : memref<128x32xbf16, #tpu.memory_space<vmem>>, vector<128x32xbf16>
    %cst_39 = arith.constant dense<0.000000e+00> : vector<16x32xf32>
    %71 = tpu.matmul %69, %70, %cst_39 {dimension_numbers = #tpu.dot_dimension_numbers<[1], [0], [0], [1], [0, 0, 1, 1], [], []>} : vector<16x128xbf16>, vector<128x32xbf16>, vector<16x32xf32> -> vector<16x32xf32>
    %c0_40 = arith.constant 0 : index
    %c0_41 = arith.constant 0 : index
    %72 = vector.load %arg10[%c0_40, %c0_41] : memref<1x32xf32, #tpu.memory_space<vmem>>, vector<1x32xf32>
    %73 = vector.broadcast %72 : vector<1x32xf32> to vector<16x32xf32>
    %74 = arith.addf %71, %73 : vector<16x32xf32>
    %75 = arith.addf %60, %74 : vector<16x32xf32>
    %c0_42 = arith.constant 0 : index
    %c0_43 = arith.constant 0 : index
    %76 = vector.load %arg13[%c0_42, %c0_43] : memref<1x32xf32, #tpu.memory_space<vmem>>, vector<1x32xf32>
    %c0_44 = arith.constant 0 : index
    %c0_45 = arith.constant 0 : index
    %77 = vector.load %arg14[%c0_44, %c0_45] : memref<1x32xf32, #tpu.memory_space<vmem>>, vector<1x32xf32>
    %cst_46 = arith.constant dense<0.000000e+00> : vector<16xf32>
    %78 = vector.multi_reduction <add>, %75, %cst_46 [1] : vector<16x32xf32> to vector<16xf32>
    %79 = vector.shape_cast %78 : vector<16xf32> to vector<16x1xf32>
    %cst_47 = arith.constant 3.200000e+01 : f32
    %80 = vector.broadcast %cst_47 : f32 to vector<16x1xf32>
    %81 = arith.divf %79, %80 : vector<16x1xf32>
    %82 = vector.broadcast %81 : vector<16x1xf32> to vector<16x32xf32>
    %83 = arith.subf %75, %82 : vector<16x32xf32>
    %84 = arith.mulf %83, %83 : vector<16x32xf32>
    %cst_48 = arith.constant dense<0.000000e+00> : vector<16xf32>
    %85 = vector.multi_reduction <add>, %84, %cst_48 [1] : vector<16x32xf32> to vector<16xf32>
    %86 = vector.shape_cast %85 : vector<16xf32> to vector<16x1xf32>
    %cst_49 = arith.constant 3.200000e+01 : f32
    %87 = vector.broadcast %cst_49 : f32 to vector<16x1xf32>
    %88 = arith.divf %86, %87 : vector<16x1xf32>
    %89 = vector.broadcast %81 : vector<16x1xf32> to vector<16x32xf32>
    %90 = arith.subf %75, %89 : vector<16x32xf32>
    %cst_50 = arith.constant 9.99999974E-6 : f32
    %91 = vector.broadcast %cst_50 : f32 to vector<16x1xf32>
    %92 = arith.addf %88, %91 : vector<16x1xf32>
    %93 = math.rsqrt %92 : vector<16x1xf32>
    %94 = vector.broadcast %93 : vector<16x1xf32> to vector<16x32xf32>
    %95 = arith.mulf %90, %94 : vector<16x32xf32>
    %96 = vector.broadcast %76 : vector<1x32xf32> to vector<16x32xf32>
    %97 = arith.mulf %95, %96 : vector<16x32xf32>
    %98 = vector.broadcast %77 : vector<1x32xf32> to vector<16x32xf32>
    %99 = arith.addf %97, %98 : vector<16x32xf32>
    %c0_51 = arith.constant 0 : index
    %c0_52 = arith.constant 0 : index
    %c0_53 = arith.constant 0 : index
    %100 = vector.load %arg15[%c0_51, %c0_52, %c0_53] : memref<1x16x32xf32, #tpu.memory_space<vmem>>, vector<1x16x32xf32>
    %101 = vector.shape_cast %100 : vector<1x16x32xf32> to vector<16x32xf32>
    %102 = vector.shape_cast %99 : vector<16x32xf32> to vector<1x16x32xf32>
    tpu.vector_store %arg15[%c0_51, %c0_52, %c0_53], %102 {strides = array<i32>} : memref<1x16x32xf32, #tpu.memory_space<vmem>>, vector<1x16x32xf32>,
    return
  }
  func.func @transform_0(%arg0: i32, %arg1: i32) -> (i32, i32, i32) {
    %c0_i32 = arith.constant 0 : i32
    %c0_i32_0 = arith.constant 0 : i32
    %c0_i32_1 = arith.constant 0 : i32
    return %arg0, %c0_i32, %c0_i32_0 : i32, i32, i32
  }
  func.func @transform_1(%arg0: i32, %arg1: i32) -> (i32, i32) {
    %c0_i32 = arith.constant 0 : i32
    %c0_i32_0 = arith.constant 0 : i32
    %c0_i32_1 = arith.constant 0 : i32
    return %c0_i32, %c0_i32_0 : i32, i32
  }
  func.func @transform_2(%arg0: i32, %arg1: i32) -> (i32, i32) {
    %c0_i32 = arith.constant 0 : i32
    %c0_i32_0 = arith.constant 0 : i32
    %c0_i32_1 = arith.constant 0 : i32
    return %c0_i32, %c0_i32_0 : i32, i32
  }
  func.func @transform_3(%arg0: i32, %arg1: i32) -> (i32, i32) {
    %c0_i32 = arith.constant 0 : i32
    %c0_i32_0 = arith.constant 0 : i32
    %c0_i32_1 = arith.constant 0 : i32
    return %c0_i32, %c0_i32_0 : i32, i32
  }
  func.func @transform_4(%arg0: i32, %arg1: i32) -> (i32, i32) {
    %c0_i32 = arith.constant 0 : i32
    %c0_i32_0 = arith.constant 0 : i32
    %c0_i32_1 = arith.constant 0 : i32
    return %c0_i32, %c0_i32_0 : i32, i32
  }
  func.func @transform_5(%arg0: i32, %arg1: i32) -> (i32, i32) {
    %c0_i32 = arith.constant 0 : i32
    %c0_i32_0 = arith.constant 0 : i32
    %c0_i32_1 = arith.constant 0 : i32
    return %c0_i32, %c0_i32_0 : i32, i32
  }
  func.func @transform_6(%arg0: i32, %arg1: i32) -> (i32, i32) {
    %c0_i32 = arith.constant 0 : i32
    %c0_i32_0 = arith.constant 0 : i32
    %c0_i32_1 = arith.constant 0 : i32
    return %c0_i32, %c0_i32_0 : i32, i32
  }
  func.func @transform_7(%arg0: i32, %arg1: i32) -> (i32, i32) {
    %c0_i32 = arith.constant 0 : i32
    %c0_i32_0 = arith.constant 0 : i32
    %c0_i32_1 = arith.constant 0 : i32
    return %c0_i32, %c0_i32_0 : i32, i32
  }
  func.func @transform_8(%arg0: i32, %arg1: i32) -> (i32, i32) {
    %c0_i32 = arith.constant 0 : i32
    %c0_i32_0 = arith.constant 0 : i32
    %c0_i32_1 = arith.constant 0 : i32
    return %c0_i32, %c0_i32_0 : i32, i32
  }
  func.func @transform_9(%arg0: i32, %arg1: i32) -> (i32, i32) {
    %c0_i32 = arith.constant 0 : i32
    %c0_i32_0 = arith.constant 0 : i32
    %c0_i32_1 = arith.constant 0 : i32
    return %c0_i32, %c0_i32_0 : i32, i32
  }
  func.func @transform_10(%arg0: i32, %arg1: i32) -> (i32, i32) {
    %c0_i32 = arith.constant 0 : i32
    %c0_i32_0 = arith.constant 0 : i32
    %c0_i32_1 = arith.constant 0 : i32
    return %c0_i32, %c0_i32_0 : i32, i32
  }
  func.func @transform_11(%arg0: i32, %arg1: i32) -> (i32, i32) {
    %c0_i32 = arith.constant 0 : i32
    %c0_i32_0 = arith.constant 0 : i32
    %c0_i32_1 = arith.constant 0 : i32
    return %c0_i32, %c0_i32_0 : i32, i32
  }
  func.func @transform_12(%arg0: i32, %arg1: i32) -> (i32, i32) {
    %c0_i32 = arith.constant 0 : i32
    %c0_i32_0 = arith.constant 0 : i32
    %c0_i32_1 = arith.constant 0 : i32
    return %c0_i32, %c0_i32_0 : i32, i32
  }
  func.func @transform_13(%arg0: i32, %arg1: i32) -> (i32, i32, i32) {
    %c0_i32 = arith.constant 0 : i32
    %c0_i32_0 = arith.constant 0 : i32
    return %arg0, %arg1, %c0_i32 : i32, i32, i32
  }
  func.func @transform_14(%arg0: i32, %arg1: i32) -> (i32, i32, i32, i32) {
    %c0_i32 = arith.constant 0 : i32
    %c0_i32_0 = arith.constant 0 : i32
    %c0_i32_1 = arith.constant 0 : i32
    return %arg0, %c0_i32, %arg1, %c0_i32_0 : i32, i32, i32, i32
  }
}

</mosaic_0001>

<bundles_post_ra>
// kernel: tpu_custom_call.1
= control target key start
LH: loop header
LB: loop body
LE: loop exit
PB: predicated region body
PF: predicated region fallthrough
CT: control target
= control target key end

     0   :  { %s5443_s0 = inlined_call_operand.vmem [shape: f32[2,32,32], index: 0, kind: input, shape index: {}]   ;;  %s5444_s1 = inlined_call_operand.vmem [shape: bf16[32,96], index: 1, kind: input, shape index: {}]   ;;  %s5445_s2 = inlined_call_operand.vmem [shape: f32[1,96], index: 2, kind: input, shape index: {}]   ;;  %s5446_s3 = inlined_call_operand.hbm [shape: bf16[32,32], index: 3, kind: input, shape index: {}]   ;;  %s5447_s4 = inlined_call_operand.vmem [shape: f32[1,32], index: 4, kind: input, shape index: {}]   ;;  %s5448_s5 = inlined_call_operand.hbm [shape: bf16[32,128], index: 5, kind: input, shape index: {}]   ;;  %s5449_s6 = inlined_call_operand.vmem [shape: f32[1,128], index: 6, kind: input, shape index: {}]   ;;  %s5450_s7 = inlined_call_operand.vmem [shape: bf16[128,32], index: 7, kind: input, shape index: {}]   ;;  %s5451_s8 = inlined_call_operand.vmem [shape: f32[1,32], index: 8, kind: input, shape index: {}]   ;;  %s5452_s9 = inlined_call_operand.vmem [shape: f32[1,32], index: 9, kind: input, shape index: {}]   ;;  %s5453_s10 = inlined_call_operand.vmem [shape: f32[1,32], index: 10, kind: input, shape index: {}]   ;;  %s5454_s11 = inlined_call_operand.vmem [shape: f32[1,32], index: 11, kind: input, shape index: {}]   ;;  %s5455_s12 = inlined_call_operand.vmem [shape: f32[1,32], index: 12, kind: input, shape index: {}]   ;;  %s5456_s13 = inlined_call_operand.hbm [shape: f32[2,32,32], index: 13, kind: output, shape index: {0}]   ;;  %s5457_s14 = inlined_call_operand.hbm [shape: f32[2,4,32,32], index: 14, kind: output, shape index: {1}]  }
   0x1   :  { %5475 = sst [smem:[#allocation29_spill]] %s5454_s11 }
   0x2   :  { %5476 = sst [smem:[#allocation30_spill]] %s5455_s12 }
   0x3   :  { %5477 = sst [smem:[#allocation31_spill]] %s5456_s13 }
   0x4   :  { %5478 = sst [smem:[#allocation32_spill]] %s5457_s14 }
   0x5   :  { %20 = vsyncpa [#allocation6], 0 }
   0x6   :  { %21 = vsyncpa [#allocation9], 0 }
   0x7   :  { %22 = vsyncpa [#allocation7], 0 }
   0x8   :  { %24 = vsyncpa [#allocation7 + $0x1], 0 }
   0x9   :  { %25 = vsyncpa [#allocation12], 0 }
   0xa   :  { %27 = vsyncpa [#allocation12 + $0x1], 0  ;;  %s4527_s29 = smov 0   ;;  %s4529_s30 = smov 0  }
   0xb   :  { %s4531_s15 = smov 0   ;;  %s4533_s16 = smov 0  }
   0xc   :  { %s4535_s17 = smov 0   ;;  %s4537_s18 = smov 0  }
   0xd   :  { %s4539_s19 = smov 0   ;;  %s4541_s20 = smov 0  }
   0xe LB: > { %5479 = sst [smem:[#allocation19_spill]] %s4395_s29  ;;  %s3825_s21 = sadd.s32 4294967295, %s4423_s20   ;;  %s4423_s20 = sphi %s4541_s20, %s33_s20   ;;  %s4419_s19 = sphi %s4539_s19, %s5513_s19   ;;  %s4415_s18 = sphi %s4537_s18, %s5512_s18   ;;  %s4411_s17 = sphi %s4535_s17, %s5511_s17   ;;  %s4407_s16 = sphi %s4533_s16, %s5510_s16   ;;  %s4403_s15 = sphi %s4531_s15, %s5509_s15   ;;  %s4399_s30 = sphi %s4529_s30, %s5515_s30   ;;  %s4395_s29 = sphi %s4527_s29, %s5514_s29  }
   0xf   : > { %5480 = sst [smem:[#allocation20_spill]] %s4403_s15  ;;  %s3826_s22 = sadd.s32 4294967294, %s4423_s20  }
  0x10   : > { %5481 = sst [smem:[#allocation21_spill]] %s4415_s18  ;;  %s42_s23 = sadd.s32 1, %s4415_s18 }
  0x11   : > { %5482 = sst [smem:[#allocation22_spill]] %s4419_s19  ;;  %s45_s24 = sadd.s32 1, %s4419_s19 }
  0x12   : > { %5483 = sst [smem:[#allocation23_spill]] %s4423_s20  ;;  %p43_p0 = scmp.ge.s32.totalorder %s42_s23, 2 }
  0x13   : > { %s332_s25 = sadd.s32 1, %s4403_s15  ;;  %p342_p1 = scmp.ne.s32.totalorder %s4403_s15, %s4399_s30 }
  0x14   : > { %p343_p2 = scmp.eq.s32.totalorder %s3825_s21, 3  ;;  %s5517_s23 = smov (%p43_p0, %s42_s23), 0 }
  0x15   : > { %5484 = sst [smem:[#allocation24_spill]] %s5517_s23  ;;  %s5519_s24 = smov (!%p43_p0, %s45_s24), %s4419_s19 }
  0x16   : > { %s328_s26 = ssub.s32 %s4415_s18, %s5517_s23  ;;  %p4579_p3 = por %p343_p2, %p342_p1 }
  0x17   : > { %p47_p4 = scmp.ge.s32.totalorder %s5519_s24, 2  ;;  %p348_p5 = scmp.ne.s32.totalorder %s4399_s30, %s4395_s29 }
  0x18   : > { %s5485_s27 = scalar_select %p4579_p3, 1, 0 }
  0x19   : > { %p349_p6 = scmp.eq.s32.totalorder %s3826_s22, 3  ;;  %p3827_p7 = scmp.ge.s32.totalorder %s4423_s20, 1 }
  0x1a   : > { %5486 = sst [smem:[#allocation25_spill]] %s5485_s27  ;;  %s5521_s24 = smov (%p47_p4, %s5519_s24), 0 }
  0x1b   : > { %5487 = sst [smem:[#allocation26_spill]] %s5521_s24  ;;  %p4588_p8 = por %p349_p6, %p348_p5 }
  0x1c   : > { %p384_p9 = scmp.lt.s32.totalorder %s4423_s20, 5  ;;  %s327_s14 = ssub.s32 %s4419_s19, %s5521_s24 }
  0x1d   : > { %s5488_s28 = scalar_select %p4588_p8, 1, 0 }
  0x1e   : > { %s329_s13 = sor.u32 %s328_s26, %s327_s14  ;;  %p4595_p10 = pnand %p3827_p7, %p384_p9 }
  0x1f   : > { %5489 = sst [smem:[#allocation27_spill]] %s5488_s28  ;;  %p330_p11 = scmp.eq.s32.totalorder %s329_s13, 0 }
  0x20   : > { %s5490_s23 = scalar_select %p4595_p10, 1, 0 }
  0x21   : > { %p4599_p12 = scmp.eq.s32.totalorder %s3825_s21, 0  ;;  %p4083_p13 = pneg %p4595_p10 }
  0x22   : > { %s4606_s22 = scalar_select %p330_p11, %s4403_s15, %s332_s25  }
  0x23   : > { %s5491_s18 = scalar_select %p4599_p12, 1, 0 }
  0x24   : > { %5492 = sst [smem:[#allocation28_spill]] %s4606_s22  ;;  %s4425_s29 = smov [#allocation5]  }
  0x25   : > { %s402_s28 = sshll.u32 %s4425_s29, 4  ;;  %p4610_p0 = pnand %p4599_p12, %p4083_p13  ;;  %s403_s28 = int_to_ptr.vmem [resolvable:$true] %s402_s28 }
  0x26   : > { %s4261_s26 = scalar_lea.hbm %s5446_s3, 256 }
  0x27   : > { %p4262_p1 = scmp.ne.s32.totalorder %s5446_s3, %s4261_s26  ;;  %p4263_p2 = pneg %p4610_p0 }
  0x28   : > { %p4268_p6 = scmp.lt.u32.totalorder %s4261_s26, %s5446_s3 }
  0x29   : > { %p4264_p4 = pnand %p4263_p2, %p4262_p1 }
  0x2b   : > { %p4265_p5 = pneg %p4264_p4 }
  0x2d   : > { %p4270_p7 = pnand %p4268_p6, %p4265_p5 }
  0x2f   : > { %4273 = shalt.err (!%p4270_p7)
}
  0x30   : > { %s4274_s22 = scalar_lea.vmem %s403_s28, 256  ;;  %p4282_p8 = scmp.lt.s32.totalorder %s403_s28, %s403_s28 }
  0x31   : > { %p4275_p9 = scmp.ne.s32.totalorder %s403_s28, %s4274_s22  ;;  %p4283_p3 = scmp.lt.s32.totalorder %s4274_s22, %s4274_s22 }
  0x33   : > { %p4277_p11 = pnand %p4275_p9, %p4263_p2  ;;  %p4284_p12 = por %p4283_p3, %p4282_p8 }
  0x35   : > { %p4278_p13 = pneg %p4277_p11 }
  0x37   : > { %p4285_p10 = pnand %p4284_p12, %p4278_p13 }
  0x39   : > { %4288 = shalt.err (!%p4285_p10)
}
  0x3a   : > { %s4426_s19 = smov 64   ;;  %s4427_s24 = smov 4  }
  0x3b   : > { %4086 = dma.hbm_to_vmem [thread:$0]  (!%p4610_p0), %s5446_s3, 256, %s403_s28, [#allocation6], %s4426_s19, %s4426_s19, %s4427_s24  }
  0x3c   : > { %s4428_s26 = smov [#allocation8]   ;;  %s4289_s20 = scalar_lea.hbm %s5448_s5, 256 }
  0x3d   : > { %s418_s29 = sshll.u32 %s4428_s26, 4  ;;  %p4290_p3 = scmp.ne.s32.totalorder %s5448_s5, %s4289_s20  ;;  %s419_s29 = int_to_ptr.vmem [resolvable:$true] %s418_s29 }
  0x3e   : > { %p4296_p12 = scmp.lt.u32.totalorder %s4289_s20, %s5448_s5 }
  0x3f   : > { %p4292_p8 = pnand %p4290_p3, %p4263_p2 }
  0x41   : > { %p4293_p10 = pneg %p4292_p8 }
  0x43   : > { %p4298_p1 = pnand %p4296_p12, %p4293_p10 }
  0x45   : > { %4301 = shalt.err (!%p4298_p1)
}
  0x46   : > { %s4302_s28 = scalar_lea.vmem %s419_s29, 256  ;;  %p4310_p7 = scmp.lt.s32.totalorder %s419_s29, %s419_s29 }
  0x47   : > { %p4303_p4 = scmp.ne.s32.totalorder %s419_s29, %s4302_s28  ;;  %p4311_p9 = scmp.lt.s32.totalorder %s4302_s28, %s4302_s28 }
  0x49   : > { %p4305_p5 = pnand %p4303_p4, %p4263_p2  ;;  %p4312_p11 = por %p4311_p9, %p4310_p7 }
  0x4b   : > { %p4306_p6 = pneg %p4305_p5 }
  0x4d   : > { %p4313_p13 = pnand %p4312_p11, %p4306_p6 }
  0x4f   : > { %4316 = shalt.err (!%p4313_p13)
}
  0x50   : > { %4089 = dma.hbm_to_vmem [thread:$0]  (!%p4610_p0), %s5448_s5, 256, %s419_s29, [#allocation9], %s4426_s19, %s4426_s19, %s4427_s24  }
  0x51   : > { %p5494_p3 = scmp.ne.s32.totalorder %s5490_s23, 0 }
  0x52   : > { %p5495_p8 = scmp.ne.s32.totalorder (!%p5494_p3), %s5491_s18, 0 }
  0x53   : > { %463 = sbr.rel (%p5494_p3) target bundleno = 2901 (0xb55), region = 72 }
  0x5a   : > { %4378 = dma.done.wait (%p5495_p8), [#allocation6], 256  }
  0x5b   : > { %4380 = vsyncadd (%p5495_p8), [#allocation6], 4294967040 }
  0x5c   : > { %4382 = dma.done.wait (%p5495_p8), [#allocation9], 256  }
  0x5d   : > { %4384 = vsyncadd (%p5495_p8), [#allocation9], 4294967040  ;;  %s4667_s11 = sand.u32 1, %s4399_s30   ;;  %p518_p0 = scmp.lt.s32.totalorder %s4411_s17, 1 }
  0x5e   : > { %s3834_s12 = sshll.u32 %s4667_s11, 4  ;;  %s3835_s20 = sshll.u32 %s4667_s11, 6 }
  0x5f   : > { %s519_s23 = scalar_select %p518_p0, %s4411_s17, 1 }
  0x60   : > { %s4678_s21 = scalar_lea.vmem [#allocation10], %s3834_s12  ;;  %s4680_s18 = scalar_lea.vmem [#allocation11], %s3835_s20 }
  0x61   : > { %s3913_s14 = sshll.u32 %s519_s23, 5  ;;  %p3838_p2 = scmp.ne.s32.totalorder %s4407_s16, 0 }
  0x62   : > { %s4676_s13 = scalar_lea.vmem %s5443_s0, %s3913_s14  ;;  %v4192_v0 = vld [vmem:[%s5444_s1] sm:$0xff] (!%p3838_p2)   ;;  %v4193_v1 = vld [vmem:[%s5444_s1 + $0x8] sm:$0xff] (!%p3838_p2)   ;;  %vm559_vm0 = vcmask (!%p3838_p2), 261120   ;;  %s4429_s27 = smov (!%p3838_p2), 112   ;;  %v4434_v39 = vmov (!%p3838_p2), 1983009808   ;;  %v664_v41 = vlaneseq (!%p3838_p2) }
  0x63   : > { %529 = sbr.rel (%p3838_p2) target bundleno = 650 (0x28a), region = 84  ;;  %3957 = vmatprep.subr.bf16.mxu0 (!%p3838_p2), %v4192_v0  ;;  %v530_v2 = vld [vmem:[%s4676_s13] sm:$0xff] (!%p3838_p2)  ;;  %v531_v3 = vld [vmem:[%s4676_s13 + $0x8] sm:$0xff] (!%p3838_p2)  ;;  %v532_v5 = vld [vmem:[%s4676_s13 + $0x10] sm:$0xff] (!%p3838_p2)  ;;  %s4430_s12 = smov (!%p3838_p2), 120   ;;  %v662_v40 = vunpack.c.l.s4 (!%p3838_p2), %v4434_v39  ;;  %vm1879_vm1 = vcmask (!%p3838_p2), 64512  }
  0x64   : > { %3958 = vmatpush3.bf16.msra.mxu0 (!%p3838_p2), %v4192_v0  ;;  %v534_v4 = vpack.c.bf16 (!%p3838_p2), %v531_v3, %v530_v2  ;;  %v533_v6 = vld [vmem:[%s4676_s13 + $0x18] sm:$0xff] (!%p3838_p2)  ;;  %v3839_v8 = vld [vmem:[%s5445_s2] ss:$0 sm:$0xff] (!%p3838_p2)  ;;  %s4431_s20 = smov (!%p3838_p2), 104   ;;  %s4432_s23 = smov (!%p3838_p2), 96   ;;  %v665_v47 = vshrl.u32 (!%p3838_p2), %v664_v41, 7 }
  0x65   : > { %3959 = vmatprep.subr.bf16.mxu0 (!%p3838_p2), %v4193_v1  ;;  %v535_v7 = vpack.c.bf16 (!%p3838_p2), %v533_v6, %v532_v5  ;;  %s4433_s14 = smov (!%p3838_p2), 64   ;;  %v4435_v44 = vmov (!%p3838_p2), 1934713408   ;;  %v663_v46 = vunpack.c.0.s8 (!%p3838_p2), %v662_v40 }
  0x66   : > { %3961 = vmatprep.mubr.msk.bf16.mxu0 (!%p3838_p2), %vm559_vm0, %v534_v4  ;;  %v694_v45 = vunpack.c.l.s4 (!%p3838_p2), %v4435_v44 }
  0x67   : > { %v4787_v51 = vsub.s32 (!%p3838_p2), %v663_v46, %v665_v47 }
  0x68   : > { %3960 = vmatpush3.bf16.msra.mxu0 (!%p3838_p2), %v4193_v1  ;;  %v695_v50 = vunpack.c.0.s8 (!%p3838_p2), %v694_v45 }
  0x6a   : > { %v4792_v58 = vsub.s32 %v695_v50, %v665_v47 }
  0x6b   : > { %3962 = vmatmul.mubr.msk.bf16.vlgmr.msra.gmra.mrb[0].mxu0 %vm559_vm0, %v535_v7 }
 0x13e   : > { %v3963_v9 = vpop.f32.mrb[0].mxu0 }
 0x13f   : > { %v609_v10 = vadd.f32 %v3963_v9, %v3839_v8  ;;  %v600_v11 = vpop.f32.mrb[1].mxu0 }
 0x140   : > { %v3964_v12 = vpop.f32.mrb[2].mxu0  ;;  %v601_v15 = vadd.f32 %v3839_v8, %v600_v11 }
 0x141   : > { %947 = vrot.lane.b32.xlu0 %v609_v10, %s4429_s27  ;;  %939 = vrot.lane.b32.xlu1 %v609_v10, %s4430_s12  ;;  %v603_v13 = vpop.f32.mrb[3].mxu0  ;;  %v612_v14 = vadd.f32 %v3964_v12, %v3839_v8  ;;  %v4714_v17 = vmul.f32 0.35355338, %v609_v10 }
 0x142   : > { %v604_v16 = vadd.f32 %v3839_v8, %v603_v13  ;;  %v4734_v20 = vmul.f32 0.35355338, %v601_v15 }
 0x143   : > { %v4719_v18 = vmul.f32 0.35355338, %v612_v14 }
 0x144   : > { %v4732_v19 = vmul.f32 0.35355338, %v604_v16 }
 0x145   : > { %955 = vrot.lane.b32.xlu0 %v609_v10, %s4431_s20  ;;  %941 = vrot.lane.b32.xlu1 %v612_v14, %s4430_s12 }
 0x149   : > { %963 = vrot.lane.b32.xlu0 %v609_v10, %s4432_s23  ;;  %949 = vrot.lane.b32.xlu1 %v612_v14, %s4429_s27 }
 0x14d   : > { %1283 = vrot.lane.b32.xlu0 %v609_v10, %s4433_s14  ;;  %957 = vrot.lane.b32.xlu1 %v612_v14, %s4431_s20 }
 0x151   : > { %965 = vrot.lane.b32.xlu1 %v612_v14, %s4432_s23  ;;  %935 = vrot.lane.b32.xlu0 %v601_v15, %s4430_s12 }
 0x155   : > { %1285 = vrot.lane.b32.xlu1 %v612_v14, %s4433_s14  ;;  %943 = vrot.lane.b32.xlu0 %v601_v15, %s4429_s27 }
 0x159   : > { %945 = vrot.lane.b32.xlu1 %v604_v16, %s4429_s27  ;;  %951 = vrot.lane.b32.xlu0 %v601_v15, %s4431_s20 }
 0x15d   : > { %953 = vrot.lane.b32.xlu1 %v604_v16, %s4431_s20  ;;  %959 = vrot.lane.b32.xlu0 %v601_v15, %s4432_s23 }
 0x161   : > { %961 = vrot.lane.b32.xlu1 %v604_v16, %s4432_s23  ;;  %1279 = vrot.lane.b32.xlu0 %v601_v15, %s4433_s14 }
 0x165   : > { %1281 = vrot.lane.b32.xlu1 %v604_v16, %s4433_s14  ;;  %627 = vrot.lane.b32.xlu0 %v4714_v17, %s4430_s12 }
 0x169   : > { %629 = vrot.lane.b32.xlu1 %v4719_v18, %s4430_s12  ;;  %639 = vrot.lane.b32.xlu0 %v4714_v17, %s4429_s27 }
 0x16d   : > { %641 = vrot.lane.b32.xlu1 %v4719_v18, %s4429_s27  ;;  %651 = vrot.lane.b32.xlu0 %v4714_v17, %s4431_s20 }
 0x171   : > { %653 = vrot.lane.b32.xlu1 %v4719_v18, %s4431_s20  ;;  %937 = vrot.lane.b32.xlu0 %v604_v16, %s4430_s12 }
 0x175   : > { %625 = vrot.lane.b32.xlu1 %v4732_v19, %s4430_s12  ;;  %623 = vrot.lane.b32.xlu0 %v4734_v20, %s4430_s12 }
 0x179   : > { %637 = vrot.lane.b32.xlu1 %v4732_v19, %s4429_s27  ;;  %635 = vrot.lane.b32.xlu0 %v4734_v20, %s4429_s27 }
 0x17d   : > { %649 = vrot.lane.b32.xlu1 %v4732_v19, %s4431_s20  ;;  %647 = vrot.lane.b32.xlu0 %v4734_v20, %s4431_s20 }
 0x1b3   : > { %v948_v21 = vpop.permute.xlu0 %947  ;;  %v940_v22 = vpop.permute.xlu1 %939 }
 0x1b4   : > { %971 = vrot.lane.b32.xlu0 %v940_v22, %s4432_s23 }
 0x1b7   : > { %v956_v23 = vpop.permute.xlu0 %955  ;;  %v942_v24 = vpop.permute.xlu1 %941 }
 0x1b8   : > { %973 = vrot.lane.b32.xlu1 %v942_v24, %s4432_s23  ;;  %979 = vrot.lane.b32.xlu0 %v948_v21, %s4432_s23 }
 0x1bb   : > { %v4751_v25 = vpop.permute.xlu0 %963  ;;  %v950_v26 = vpop.permute.xlu1 %949 }
 0x1bc   : > { %981 = vrot.lane.b32.xlu1 %v950_v26, %s4432_s23  ;;  %987 = vrot.lane.b32.xlu0 %v956_v23, %s4432_s23 }
 0x1bf   : > { %v4755_v27 = vpop.permute.xlu0 %1283  ;;  %v4757_v28 = vpop.permute.xlu1 %957 }
 0x1c0   : > { %989 = vrot.lane.b32.xlu1 %v4757_v28, %s4432_s23  ;;  %1291 = vrot.lane.b32.xlu0 %v940_v22, %s4433_s14 }
 0x1c3   : > { %v4762_v29 = vpop.permute.xlu1 %965  ;;  %v936_v30 = vpop.permute.xlu0 %935 }
 0x1c4   : > { %1293 = vrot.lane.b32.xlu1 %v942_v24, %s4433_s14  ;;  %1299 = vrot.lane.b32.xlu0 %v948_v21, %s4433_s14 }
 0x1c7   : > { %v4766_v31 = vpop.permute.xlu1 %1285  ;;  %v944_v32 = vpop.permute.xlu0 %943 }
 0x1c8   : > { %1301 = vrot.lane.b32.xlu1 %v950_v26, %s4433_s14  ;;  %967 = vrot.lane.b32.xlu0 %v936_v30, %s4432_s23 }
 0x1cb   : > { %v4770_v33 = vpop.permute.xlu1 %945  ;;  %v952_v34 = vpop.permute.xlu0 %951 }
 0x1cc   : > { %975 = vrot.lane.b32.xlu0 %v944_v32, %s4432_s23 }
 0x1cf   : > { %v4773_v35 = vpop.permute.xlu1 %953  ;;  %v4775_v36 = vpop.permute.xlu0 %959 }
 0x1d0   : > { %983 = vrot.lane.b32.xlu0 %v952_v34, %s4432_s23 }
 0x1d3   : > { %v4778_v37 = vpop.permute.xlu1 %961  ;;  %v4780_v38 = vpop.permute.xlu0 %1279 }
 0x1d4   : > { %1287 = vrot.lane.b32.xlu0 %v936_v30, %s4433_s14 }
 0x1d7   : > { %v4783_v42 = vpop.permute.xlu1 %1281  ;;  %v628_v43 = vpop.permute.xlu0 %627 }
 0x1d8   : > { %1295 = vrot.lane.b32.xlu0 %v944_v32, %s4433_s14 }
 0x1db   : > { %v630_v48 = vpop.permute.xlu1 %629  ;;  %v640_v49 = vpop.permute.xlu0 %639 }
 0x1dc   : > { %1303 = vrot.lane.b32.xlu0 %v952_v34, %s4433_s14  ;;  %v795_v52 = vcombine.low %v4714_v17, %v640_v49  ;;  %v796_v53 = vcombine.high %v4714_v17, %v640_v49 }
 0x1de   : > { %v803_v59 = vrot.slane %v795_v52, %v4787_v51  ;;  %v810_v60 = vrot.slane %v796_v53, %v4787_v51 }
 0x1df   : > { %v642_v54 = vpop.permute.xlu1 %641  ;;  %v652_v55 = vpop.permute.xlu0 %651 }
 0x1e0   : > { %v811_v56 = vcombine.low %v628_v43, %v652_v55  ;;  %v812_v57 = vcombine.high %v628_v43, %v652_v55  ;;  %1307 = vrot.lane.b32.xlu0 %v956_v23, %s4433_s14  ;;  %v863_v63 = vcombine.low %v4719_v18, %v642_v54  ;;  %v864_v0 = vcombine.high %v4719_v18, %v642_v54 }
 0x1e2   : > { %v819_v61 = vrot.slane %v811_v56, %v4787_v51  ;;  %v826_v62 = vrot.slane %v812_v57, %v4787_v51  ;;  %v871_v13 = vrot.slane %v863_v63, %v4787_v51  ;;  %v878_v14 = vrot.slane %v864_v0, %v4787_v51 }
 0x1e3   : > { %v654_v1 = vpop.permute.xlu1 %653  ;;  %v938_v2 = vpop.permute.xlu0 %937 }
 0x1e4   : > { %v827_v3 = vcombine.low %v803_v59, %v819_v61  ;;  %v828_v4 = vcombine.high %v803_v59, %v819_v61  ;;  %v843_v5 = vcombine.low %v810_v60, %v826_v62  ;;  %v844_v6 = vcombine.high %v810_v60, %v826_v62  ;;  %969 = vrot.lane.b32.xlu1 %v938_v2, %s4432_s23 }
 0x1e5   : > { %v879_v7 = vcombine.low %v630_v48, %v654_v1  ;;  %v880_v8 = vcombine.high %v630_v48, %v654_v1 }
 0x1e6   : > { %v835_v9 = vrot.slane %v827_v3, %v4792_v58  ;;  %v842_v10 = vrot.slane %v828_v4, %v4792_v58  ;;  %v851_v11 = vrot.slane %v843_v5, %v4792_v58  ;;  %v858_v12 = vrot.slane %v844_v6, %v4792_v58 }
 0x1e7   : > { %v887_v15 = vrot.slane %v879_v7, %v4787_v51  ;;  %v894_v16 = vrot.slane %v880_v8, %v4787_v51  ;;  %v4809_v17 = vpop.permute.xlu1 %625  ;;  %v4811_v18 = vpop.permute.xlu0 %623 }
 0x1e8   : > { %v1735_v21 = vcombine.low %v835_v9, %v842_v10  ;;  %v3848_v22 = vcombine.high %v835_v9, %v842_v10  ;;  %v1751_v23 = vcombine.low %v851_v11, %v858_v12  ;;  %v3849_v24 = vcombine.high %v851_v11, %v858_v12  ;;  %977 = vrot.lane.b32.xlu1 %v4770_v33, %s4432_s23 }
 0x1e9   : > { %v895_v26 = vcombine.low %v871_v13, %v887_v15  ;;  %v896_v30 = vcombine.high %v871_v13, %v887_v15  ;;  %v911_v32 = vcombine.low %v878_v14, %v894_v16  ;;  %v912_v34 = vcombine.high %v878_v14, %v894_v16 }
 0x1ea   : > { %v1742_v39 = vrot.slane %v1735_v21, %v4787_v51  ;;  %v1750_v40 = vrot.slane %v3848_v22, %v4787_v51  ;;  %v1758_v41 = vrot.slane %v1751_v23, %v4787_v51  ;;  %v1766_v43 = vrot.slane %v3849_v24, %v4787_v51 }
 0x1eb   : > { %v903_v44 = vrot.slane %v895_v26, %v4792_v58  ;;  %v910_v45 = vrot.slane %v896_v30, %v4792_v58  ;;  %v919_v46 = vrot.slane %v911_v32, %v4792_v58  ;;  %v926_v47 = vrot.slane %v912_v34, %v4792_v58  ;;  %v638_v57 = vpop.permute.xlu1 %637  ;;  %v636_v59 = vpop.permute.xlu0 %635 }
 0x1ec   : > { %v1767_v48 = vcombine.low %v1742_v39, %v1750_v40  ;;  %v1768_v49 = vcombine.high %v1742_v39, %v1750_v40  ;;  %v1783_v50 = vcombine.low %v1758_v41, %v1766_v43  ;;  %v1784_v52 = vcombine.high %v1758_v41, %v1766_v43  ;;  %985 = vrot.lane.b32.xlu1 %v4773_v35, %s4432_s23 }
 0x1ed   : > { %v1803_v53 = vcombine.low %v903_v44, %v910_v45  ;;  %v3850_v54 = vcombine.high %v903_v44, %v910_v45  ;;  %v1819_v55 = vcombine.low %v919_v46, %v926_v47  ;;  %v3851_v56 = vcombine.high %v919_v46, %v926_v47 }
 0x1ee   : > { %v1775_v60 = vrot.slane %v1767_v48, %v4792_v58  ;;  %v1782_v61 = vrot.slane %v1768_v49, %v4792_v58  ;;  %v1791_v62 = vrot.slane %v1783_v50, %v4792_v58  ;;  %v1798_v63 = vrot.slane %v1784_v52, %v4792_v58 }
 0x1ef   : > { %v1810_v0 = vrot.slane %v1803_v53, %v4787_v51  ;;  %v1818_v1 = vrot.slane %v3850_v54, %v4787_v51  ;;  %v1826_v3 = vrot.slane %v1819_v55, %v4787_v51  ;;  %v1834_v4 = vrot.slane %v3851_v56, %v4787_v51  ;;  %v650_v23 = vpop.permute.xlu1 %649 }
 0x1f0   : > { %v1799_v5 = vcombine.low %v1775_v60, %v1791_v62  ;;  %v1800_v6 = vcombine.high %v1775_v60, %v1791_v62  ;;  %1289 = vrot.lane.b32.xlu1 %v938_v2, %s4433_s14  ;;  %v1801_v11 = vcombine.low %v1782_v61, %v1798_v63  ;;  %v1802_v12 = vcombine.high %v1782_v61, %v1798_v63  ;;  %v648_v2 = vpop.permute.xlu0 %647 }
 0x1f1   : > { %v1835_v7 = vcombine.low %v1810_v0, %v1818_v1  ;;  %v1836_v8 = vcombine.high %v1810_v0, %v1818_v1  ;;  %v1851_v9 = vcombine.low %v1826_v3, %v1834_v4  ;;  %v1852_v10 = vcombine.high %v1826_v3, %v1834_v4 }
 0x1f2   : > { %v727_v13 = vcombine.low %v4732_v19, %v638_v57  ;;  %v728_v14 = vcombine.high %v4732_v19, %v638_v57  ;;  %v659_v30 = vcombine.low %v4734_v20, %v636_v59  ;;  %v660_v32 = vcombine.high %v4734_v20, %v636_v59 }
 0x1f3   : > { %v1843_v15 = vrot.slane %v1835_v7, %v4792_v58  ;;  %v1850_v16 = vrot.slane %v1836_v8, %v4792_v58  ;;  %v1859_v21 = vrot.slane %v1851_v9, %v4792_v58  ;;  %v1866_v22 = vrot.slane %v1852_v10, %v4792_v58 }
 0x1f4   : > { %v735_v24 = vrot.slane %v727_v13, %v4787_v51  ;;  %v742_v26 = vrot.slane %v728_v14, %v4787_v51  ;;  %1297 = vrot.lane.b32.xlu1 %v4770_v33, %s4433_s14  ;;  %v743_v41 = vcombine.low %v4809_v17, %v650_v23  ;;  %v744_v43 = vcombine.high %v4809_v17, %v650_v23 }
 0x1f5   : > { %v1867_v19 = vcombine.low %v1843_v15, %v1859_v21  ;;  %v1868_v34 = vcombine.high %v1843_v15, %v1859_v21  ;;  %v1869_v39 = vcombine.low %v1850_v16, %v1866_v22  ;;  %v1870_v40 = vcombine.high %v1850_v16, %v1866_v22 }
 0x1f6   : > { %v675_v44 = vcombine.low %v4811_v18, %v648_v2  ;;  %v676_v45 = vcombine.high %v4811_v18, %v648_v2  ;;  %v751_v20 = vrot.slane %v743_v41, %v4787_v51  ;;  %v758_v33 = vrot.slane %v744_v43, %v4787_v51 }
 0x1f7   : > { %v1872_v46 = vpack.c.bf16 %v1867_v19, %v1799_v5  ;;  %v1874_v47 = vpack.c.bf16 %v1868_v34, %v1800_v6  ;;  %v1876_v48 = vpack.c.bf16 %v1869_v39, %v1801_v11  ;;  %v1878_v49 = vpack.c.bf16 %v1870_v40, %v1802_v12 }
 0x1f8   : > { %v683_v50 = vrot.slane %v675_v44, %v4787_v51  ;;  %v690_v52 = vrot.slane %v676_v45, %v4787_v51  ;;  %1305 = vrot.lane.b32.xlu1 %v4773_v35, %s4433_s14  ;;  %v667_v17 = vrot.slane %v659_v30, %v4787_v51  ;;  %v674_v18 = vrot.slane %v660_v32, %v4787_v51 }
 0x1f9   : > { %1881 = vst.msk [vmem:[#allocation2 + $0x8] sm:$0xff] %vm1879_vm1, %v1872_v46  ;;  %1883 = vst.msk [vmem:[#allocation2 + $0x18] sm:$0xff] %vm1879_vm1, %v1874_v47  ;;  %v759_v53 = vcombine.low %v735_v24, %v751_v20  ;;  %v760_v54 = vcombine.high %v735_v24, %v751_v20  ;;  %v775_v55 = vcombine.low %v742_v26, %v758_v33 }
 0x1fa   : > { %1885 = vst.msk [vmem:[#allocation2 + $0x28] sm:$0xff] %vm1879_vm1, %v1876_v48  ;;  %1887 = vst.msk [vmem:[#allocation2 + $0x38] sm:$0xff] %vm1879_vm1, %v1878_v49  ;;  %v776_v56 = vcombine.high %v742_v26, %v758_v33  ;;  %v691_v57 = vcombine.low %v667_v17, %v683_v50  ;;  %v692_v59 = vcombine.high %v667_v17, %v683_v50 }
 0x1fb   : > { %v707_v60 = vcombine.low %v674_v18, %v690_v52  ;;  %v708_v35 = vcombine.high %v674_v18, %v690_v52  ;;  %v767_v61 = vrot.slane %v759_v53, %v4792_v58  ;;  %v774_v62 = vrot.slane %v760_v54, %v4792_v58 }
 0x1fc   : > { %v783_v63 = vrot.slane %v775_v55, %v4792_v58  ;;  %v790_v0 = vrot.slane %v776_v56, %v4792_v58  ;;  %1309 = vrot.lane.b32.xlu1 %v4757_v28, %s4433_s14  ;;  %v699_v1 = vrot.slane %v691_v57, %v4792_v58  ;;  %v706_v3 = vrot.slane %v692_v59, %v4792_v58 }
 0x1fd   : > { %v715_v4 = vrot.slane %v707_v60, %v4792_v58  ;;  %v722_v5 = vrot.slane %v708_v35, %v4792_v58  ;;  %v1667_v6 = vcombine.low %v767_v61, %v774_v62  ;;  %v3846_v7 = vcombine.high %v767_v61, %v774_v62 }
 0x1fe   : > { %v1683_v8 = vcombine.low %v783_v63, %v790_v0  ;;  %v3847_v9 = vcombine.high %v783_v63, %v790_v0  ;;  %v1599_v10 = vcombine.low %v699_v1, %v706_v3  ;;  %v3844_v11 = vcombine.high %v699_v1, %v706_v3 }
 0x1ff   : > { %v1615_v12 = vcombine.low %v715_v4, %v722_v5  ;;  %v3845_v13 = vcombine.high %v715_v4, %v722_v5  ;;  %v1674_v14 = vrot.slane %v1667_v6, %v4787_v51  ;;  %v1682_v28 = vrot.slane %v3846_v7, %v4787_v51 }
 0x200   : > { %v1690_v15 = vrot.slane %v1683_v8, %v4787_v51  ;;  %v1698_v16 = vrot.slane %v3847_v9, %v4787_v51  ;;  %v1606_v21 = vrot.slane %v1599_v10, %v4787_v51  ;;  %v1614_v22 = vrot.slane %v3844_v11, %v4787_v51 }
 0x201   : > { %v1622_v23 = vrot.slane %v1615_v12, %v4787_v51  ;;  %v1630_v2 = vrot.slane %v3845_v13, %v4787_v51  ;;  %v1699_v24 = vcombine.low %v1674_v14, %v1682_v28  ;;  %v1700_v26 = vcombine.high %v1674_v14, %v1682_v28 }
 0x202   : > { %v1715_v30 = vcombine.low %v1690_v15, %v1698_v16  ;;  %v1716_v32 = vcombine.high %v1690_v15, %v1698_v16  ;;  %v1631_v19 = vcombine.low %v1606_v21, %v1614_v22  ;;  %v1632_v34 = vcombine.high %v1606_v21, %v1614_v22 }
 0x203   : > { %v1647_v39 = vcombine.low %v1622_v23, %v1630_v2  ;;  %v1648_v40 = vcombine.high %v1622_v23, %v1630_v2  ;;  %v1707_v41 = vrot.slane %v1699_v24, %v4792_v58  ;;  %v1714_v43 = vrot.slane %v1700_v26, %v4792_v58 }
 0x204   : > { %v1723_v44 = vrot.slane %v1715_v30, %v4792_v58  ;;  %v1730_v45 = vrot.slane %v1716_v32, %v4792_v58  ;;  %v1639_v46 = vrot.slane %v1631_v19, %v4792_v58  ;;  %v1646_v47 = vrot.slane %v1632_v34, %v4792_v58 }
 0x205   : > { %v1655_v48 = vrot.slane %v1647_v39, %v4792_v58  ;;  %v1662_v49 = vrot.slane %v1648_v40, %v4792_v58 }
 0x206   : > { %v1731_v20 = vcombine.low %v1707_v41, %v1723_v44  ;;  %v1732_v33 = vcombine.high %v1707_v41, %v1723_v44  ;;  %v1733_v50 = vcombine.low %v1714_v43, %v1730_v45  ;;  %v1734_v52 = vcombine.high %v1714_v43, %v1730_v45 }
 0x207   : > { %v1663_v17 = vcombine.low %v1639_v46, %v1655_v48  ;;  %v1664_v18 = vcombine.high %v1639_v46, %v1655_v48  ;;  %v1665_v53 = vcombine.low %v1646_v47, %v1662_v49  ;;  %v1666_v54 = vcombine.high %v1646_v47, %v1662_v49 }
 0x209   : > { %v1871_v55 = vpack.c.bf16 %v1731_v20, %v1663_v17  ;;  %v1873_v56 = vpack.c.bf16 %v1732_v33, %v1664_v18  ;;  %v1875_v57 = vpack.c.bf16 %v1733_v50, %v1665_v53  ;;  %v1877_v59 = vpack.c.bf16 %v1734_v52, %v1666_v54 }
 0x20b   : > { %1880 = vst.msk [vmem:[#allocation2] sm:$0xff] %vm1879_vm1, %v1871_v55  ;;  %1882 = vst.msk [vmem:[#allocation2 + $0x10] sm:$0xff] %vm1879_vm1, %v1873_v56 }
 0x20c   : > { %1884 = vst.msk [vmem:[#allocation2 + $0x20] sm:$0xff] %vm1879_vm1, %v1875_v57  ;;  %1886 = vst.msk [vmem:[#allocation2 + $0x30] sm:$0xff] %vm1879_vm1, %v1877_v59 }
 0x226   : > { %v972_v60 = vpop.permute.xlu0 %971 }
 0x22a   : > { %v974_v35 = vpop.permute.xlu1 %973  ;;  %v980_v61 = vpop.permute.xlu0 %979 }
 0x22b   : > { %v1143_v62 = vcombine.low %v4751_v25, %v980_v61  ;;  %v1144_v63 = vcombine.high %v4751_v25, %v980_v61 }
 0x22d   : > { %v1151_v5 = vrot.slane %v1143_v62, %v4787_v51  ;;  %v1158_v6 = vrot.slane %v1144_v63, %v4787_v51 }
 0x22e   : > { %v982_v0 = vpop.permute.xlu1 %981  ;;  %v988_v1 = vpop.permute.xlu0 %987 }
 0x22f   : > { %v1159_v3 = vcombine.low %v972_v60, %v988_v1  ;;  %v1160_v4 = vcombine.high %v972_v60, %v988_v1  ;;  %v1211_v9 = vcombine.low %v4762_v29, %v982_v0  ;;  %v1212_v10 = vcombine.high %v4762_v29, %v982_v0 }
 0x231   : > { %v1167_v7 = vrot.slane %v1159_v3, %v4787_v51  ;;  %v1174_v8 = vrot.slane %v1160_v4, %v4787_v51  ;;  %v1219_v24 = vrot.slane %v1211_v9, %v4787_v51  ;;  %v1226_v29 = vrot.slane %v1212_v10, %v4787_v51 }
 0x232   : > { %v990_v11 = vpop.permute.xlu1 %989  ;;  %v4900_v12 = vpop.permute.xlu0 %1291 }
 0x233   : > { %v1175_v25 = vcombine.low %v1151_v5, %v1167_v7  ;;  %v1176_v13 = vcombine.high %v1151_v5, %v1167_v7  ;;  %v1191_v14 = vcombine.low %v1158_v6, %v1174_v8  ;;  %v1192_v28 = vcombine.high %v1158_v6, %v1174_v8 }
 0x234   : > { %v1227_v15 = vcombine.low %v974_v35, %v990_v11  ;;  %v1228_v16 = vcombine.high %v974_v35, %v990_v11 }
 0x235   : > { %v1183_v21 = vrot.slane %v1175_v25, %v4792_v58  ;;  %v1190_v22 = vrot.slane %v1176_v13, %v4792_v58  ;;  %v1199_v23 = vrot.slane %v1191_v14, %v4792_v58  ;;  %v1206_v2 = vrot.slane %v1192_v28, %v4792_v58 }
 0x236   : > { %v1235_v26 = vrot.slane %v1227_v15, %v4787_v51  ;;  %v1242_v30 = vrot.slane %v1228_v16, %v4787_v51  ;;  %v4910_v32 = vpop.permute.xlu0 %1299 }
 0x237   : > { %v2024_v19 = vcombine.low %v1183_v21, %v1190_v22  ;;  %v3856_v34 = vcombine.high %v1183_v21, %v1190_v22  ;;  %v2040_v39 = vcombine.low %v1199_v23, %v1206_v2  ;;  %v3857_v40 = vcombine.high %v1199_v23, %v1206_v2 }
 0x238   : > { %v1243_v41 = vcombine.low %v1219_v24, %v1235_v26  ;;  %v1244_v43 = vcombine.high %v1219_v24, %v1235_v26  ;;  %v1259_v44 = vcombine.low %v1226_v29, %v1242_v30  ;;  %v1260_v45 = vcombine.high %v1226_v29, %v1242_v30 }
 0x239   : > { %v2031_v46 = vrot.slane %v2024_v19, %v4787_v51  ;;  %v2039_v47 = vrot.slane %v3856_v34, %v4787_v51  ;;  %v2047_v48 = vrot.slane %v2040_v39, %v4787_v51  ;;  %v2055_v49 = vrot.slane %v3857_v40, %v4787_v51 }
 0x23a   : > { %v1251_v20 = vrot.slane %v1243_v41, %v4792_v58  ;;  %v1258_v33 = vrot.slane %v1244_v43, %v4792_v58  ;;  %v1267_v50 = vrot.slane %v1259_v44, %v4792_v58  ;;  %v1274_v52 = vrot.slane %v1260_v45, %v4792_v58  ;;  %v968_v17 = vpop.permute.xlu0 %967 }
 0x23b   : > { %v2056_v18 = vcombine.low %v2031_v46, %v2039_v47  ;;  %v2057_v53 = vcombine.high %v2031_v46, %v2039_v47  ;;  %v2072_v54 = vcombine.low %v2047_v48, %v2055_v49  ;;  %v2073_v55 = vcombine.high %v2047_v48, %v2055_v49 }
 0x23c   : > { %v2092_v56 = vcombine.low %v1251_v20, %v1258_v33  ;;  %v3858_v57 = vcombine.high %v1251_v20, %v1258_v33  ;;  %v2108_v59 = vcombine.low %v1267_v50, %v1274_v52  ;;  %v3859_v60 = vcombine.high %v1267_v50, %v1274_v52 }
 0x23d   : > { %v2064_v1 = vrot.slane %v2056_v18, %v4792_v58  ;;  %v2071_v3 = vrot.slane %v2057_v53, %v4792_v58  ;;  %v2080_v4 = vrot.slane %v2072_v54, %v4792_v58  ;;  %v2087_v5 = vrot.slane %v2073_v55, %v4792_v58  ;;  %v4946_v53 = vpop.permute.xlu1 %1293 }
 0x23e   : > { %v2099_v35 = vrot.slane %v2092_v56, %v4787_v51  ;;  %v2107_v61 = vrot.slane %v3858_v57, %v4787_v51  ;;  %v2115_v62 = vrot.slane %v2108_v59, %v4787_v51  ;;  %v2123_v63 = vrot.slane %v3859_v60, %v4787_v51  ;;  %v976_v0 = vpop.permute.xlu0 %975 }
 0x23f   : > { %v2088_v28 = vcombine.low %v2064_v1, %v2080_v4  ;;  %v2089_v15 = vcombine.high %v2064_v1, %v2080_v4  ;;  %v2090_v16 = vcombine.low %v2071_v3, %v2087_v5  ;;  %v2091_v21 = vcombine.high %v2071_v3, %v2087_v5 }
 0x240   : > { %v2124_v6 = vcombine.low %v2099_v35, %v2107_v61  ;;  %v2125_v7 = vcombine.high %v2099_v35, %v2107_v61  ;;  %v2140_v8 = vcombine.low %v2115_v62, %v2123_v63  ;;  %v2141_v9 = vcombine.high %v2115_v62, %v2123_v63 }
 0x241   : > { %v1007_v29 = vcombine.low %v4775_v36, %v976_v0  ;;  %v1008_v26 = vcombine.high %v4775_v36, %v976_v0  ;;  %v1302_v1 = vpop.permute.xlu1 %1301 }
 0x242   : > { %v2132_v10 = vrot.slane %v2124_v6, %v4792_v58  ;;  %v2139_v11 = vrot.slane %v2125_v7, %v4792_v58  ;;  %v2148_v25 = vrot.slane %v2140_v8, %v4792_v58  ;;  %v2155_v13 = vrot.slane %v2141_v9, %v4792_v58  ;;  %v984_v14 = vpop.permute.xlu0 %983 }
 0x243   : > { %v1023_v30 = vcombine.low %v968_v17, %v984_v14  ;;  %v1024_v19 = vcombine.high %v968_v17, %v984_v14  ;;  %v1015_v44 = vrot.slane %v1007_v29, %v4787_v51  ;;  %v1022_v45 = vrot.slane %v1008_v26, %v4787_v51 }
 0x244   : > { %v2156_v22 = vcombine.low %v2132_v10, %v2148_v25  ;;  %v2157_v23 = vcombine.high %v2132_v10, %v2148_v25  ;;  %v2158_v2 = vcombine.low %v2139_v11, %v2155_v13  ;;  %v2159_v24 = vcombine.high %v2139_v11, %v2155_v13 }
 0x245   : > { %v1031_v46 = vrot.slane %v1023_v30, %v4787_v51  ;;  %v1038_v47 = vrot.slane %v1024_v19, %v4787_v51  ;;  %v1463_v13 = vcombine.low %v4755_v27, %v4910_v32  ;;  %v1464_v14 = vcombine.high %v4755_v27, %v4910_v32 }
 0x246   : > { %v2161_v34 = vpack.c.bf16 %v2156_v22, %v2088_v28  ;;  %v2163_v39 = vpack.c.bf16 %v2157_v23, %v2089_v15  ;;  %v2165_v40 = vpack.c.bf16 %v2158_v2, %v2090_v16  ;;  %v2167_v41 = vpack.c.bf16 %v2159_v24, %v2091_v21  ;;  %v1288_v43 = vpop.permute.xlu0 %1287 }
 0x247   : > { %v1039_v36 = vcombine.low %v1015_v44, %v1031_v46  ;;  %v1040_v48 = vcombine.high %v1015_v44, %v1031_v46  ;;  %v1055_v49 = vcombine.low %v1022_v45, %v1038_v47  ;;  %v1056_v20 = vcombine.high %v1022_v45, %v1038_v47 }
 0x248   : > { %2169 = vst.msk [vmem:[#allocation3 + $0x8] sm:$0xff] %vm1879_vm1, %v2161_v34  ;;  %2171 = vst.msk [vmem:[#allocation3 + $0x18] sm:$0xff] %vm1879_vm1, %v2163_v39  ;;  %v1531_v44 = vcombine.low %v4766_v31, %v1302_v1  ;;  %v1532_v45 = vcombine.high %v4766_v31, %v1302_v1 }
 0x249   : > { %2173 = vst.msk [vmem:[#allocation3 + $0x28] sm:$0xff] %vm1879_vm1, %v2165_v40  ;;  %2175 = vst.msk [vmem:[#allocation3 + $0x38] sm:$0xff] %vm1879_vm1, %v2167_v41  ;;  %v1047_v50 = vrot.slane %v1039_v36, %v4792_v58  ;;  %v1054_v52 = vrot.slane %v1040_v48, %v4792_v58  ;;  %v1063_v17 = vrot.slane %v1055_v49, %v4792_v58 }
 0x24a   : > { %v1296_v33 = vpop.permute.xlu0 %1295  ;;  %v1070_v18 = vrot.slane %v1056_v20, %v4792_v58  ;;  %v1471_v41 = vrot.slane %v1463_v13, %v4787_v51 }
 0x24b   : > { %v1888_v54 = vcombine.low %v1047_v50, %v1054_v52  ;;  %v3852_v55 = vcombine.high %v1047_v50, %v1054_v52  ;;  %v1327_v56 = vcombine.low %v4780_v38, %v1296_v33  ;;  %v1328_v57 = vcombine.high %v4780_v38, %v1296_v33 }
 0x24c   : > { %v1904_v60 = vcombine.low %v1063_v17, %v1070_v18  ;;  %v3853_v35 = vcombine.high %v1063_v17, %v1070_v18 }
 0x24d   : > { %v1895_v63 = vrot.slane %v1888_v54, %v4787_v51  ;;  %v1903_v0 = vrot.slane %v3852_v55, %v4787_v51  ;;  %v1335_v3 = vrot.slane %v1327_v56, %v4787_v51  ;;  %v1342_v4 = vrot.slane %v1328_v57, %v4787_v51 }
 0x24e   : > { %v1304_v59 = vpop.permute.xlu0 %1303  ;;  %v1911_v38 = vrot.slane %v1904_v60, %v4787_v51  ;;  %v1919_v7 = vrot.slane %v3853_v35, %v4787_v51  ;;  %v4991_v54 = vrot.slane %v1531_v44, %v4787_v51  ;;  %v4994_v55 = vrot.slane %v1532_v45, %v4787_v51 }
 0x24f   : > { %v1343_v61 = vcombine.low %v1288_v43, %v1304_v59  ;;  %v1344_v62 = vcombine.high %v1288_v43, %v1304_v59  ;;  %v1920_v28 = vcombine.low %v1895_v63, %v1903_v0  ;;  %v1921_v15 = vcombine.high %v1895_v63, %v1903_v0 }
 0x250   : > { %v1936_v24 = vcombine.low %v1911_v38, %v1919_v7  ;;  %v1937_v29 = vcombine.high %v1911_v38, %v1919_v7  ;;  %v1478_v43 = vrot.slane %v1464_v14, %v4787_v51 }
 0x251   : > { %v1351_v5 = vrot.slane %v1343_v61, %v4787_v51  ;;  %v1358_v6 = vrot.slane %v1344_v62, %v4787_v51  ;;  %v4979_v49 = vrot.slane %v1920_v28, %v4792_v58  ;;  %v4982_v20 = vrot.slane %v1921_v15, %v4792_v58 }
 0x252   : > { %v1308_v25 = vpop.permute.xlu0 %1307  ;;  %v4985_v33 = vrot.slane %v1936_v24, %v4792_v58  ;;  %v4988_v31 = vrot.slane %v1937_v29, %v4792_v58 }
 0x253   : > { %v1359_v8 = vcombine.low %v1335_v3, %v1351_v5  ;;  %v1360_v9 = vcombine.high %v1335_v3, %v1351_v5  ;;  %v1375_v10 = vcombine.low %v1342_v4, %v1358_v6  ;;  %v1376_v11 = vcombine.high %v1342_v4, %v1358_v6 }
 0x254   : > { %v1479_v26 = vcombine.low %v4900_v12, %v1308_v25  ;;  %v1480_v30 = vcombine.high %v4900_v12, %v1308_v25  ;;  %v1952_v61 = vcombine.low %v4979_v49, %v4985_v33  ;;  %v1953_v62 = vcombine.high %v4979_v49, %v4985_v33 }
 0x255   : > { %v1367_v16 = vrot.slane %v1359_v8, %v4792_v58  ;;  %v1374_v21 = vrot.slane %v1360_v9, %v4792_v58  ;;  %v1383_v22 = vrot.slane %v1375_v10, %v4792_v58  ;;  %v1390_v23 = vrot.slane %v1376_v11, %v4792_v58 }
 0x256   : > { %v970_v2 = vpop.permute.xlu1 %969  ;;  %v1487_v39 = vrot.slane %v1479_v26, %v4787_v51  ;;  %v1494_v40 = vrot.slane %v1480_v30, %v4787_v51  ;;  %v1954_v63 = vcombine.low %v4982_v20, %v4988_v31  ;;  %v1955_v0 = vcombine.high %v4982_v20, %v4988_v31 }
 0x257   : > { %v2176_v19 = vcombine.low %v1367_v16, %v1374_v21  ;;  %v3860_v34 = vcombine.high %v1367_v16, %v1374_v21  ;;  %v2192_v27 = vcombine.low %v1383_v22, %v1390_v23  ;;  %v3861_v32 = vcombine.high %v1383_v22, %v1390_v23 }
 0x258   : > { %v1495_v50 = vcombine.low %v1471_v41, %v1487_v39  ;;  %v1496_v52 = vcombine.high %v1471_v41, %v1487_v39  ;;  %v1511_v17 = vcombine.low %v1478_v43, %v1494_v40  ;;  %v1512_v18 = vcombine.high %v1478_v43, %v1494_v40 }
 0x259   : > { %v2183_v47 = vrot.slane %v2176_v19, %v4787_v51  ;;  %v2191_v12 = vrot.slane %v3860_v34, %v4787_v51  ;;  %v2199_v36 = vrot.slane %v2192_v27, %v4787_v51  ;;  %v2207_v48 = vrot.slane %v3861_v32, %v4787_v51 }
 0x25a   : > { %v978_v46 = vpop.permute.xlu1 %977  ;;  %v1503_v1 = vrot.slane %v1495_v50, %v4792_v58  ;;  %v1510_v3 = vrot.slane %v1496_v52, %v4792_v58  ;;  %v1519_v4 = vrot.slane %v1511_v17, %v4792_v58  ;;  %v1526_v5 = vrot.slane %v1512_v18, %v4792_v58 }
 0x25b   : > { %v2208_v57 = vcombine.low %v2183_v47, %v2191_v12  ;;  %v2209_v59 = vcombine.high %v2183_v47, %v2191_v12  ;;  %v2224_v60 = vcombine.low %v2199_v36, %v2207_v48  ;;  %v2225_v35 = vcombine.high %v2199_v36, %v2207_v48 }
 0x25c   : > { %v1075_v6 = vcombine.low %v4778_v37, %v978_v46  ;;  %v1076_v38 = vcombine.high %v4778_v37, %v978_v46  ;;  %v2312_v16 = vcombine.low %v1503_v1, %v1510_v3  ;;  %v3864_v21 = vcombine.high %v1503_v1, %v1510_v3 }
 0x25d   : > { %v5011_v10 = vrot.slane %v2208_v57, %v4792_v58  ;;  %v5014_v11 = vrot.slane %v2209_v59, %v4792_v58  ;;  %v5017_v25 = vrot.slane %v2224_v60, %v4792_v58  ;;  %v5020_v13 = vrot.slane %v2225_v35, %v4792_v58 }
 0x25e   : > { %v986_v56 = vpop.permute.xlu1 %985  ;;  %v1083_v14 = vrot.slane %v1075_v6, %v4787_v51  ;;  %v1090_v28 = vrot.slane %v1076_v38, %v4787_v51  ;;  %v2328_v22 = vcombine.low %v1519_v4, %v1526_v5  ;;  %v3865_v23 = vcombine.high %v1519_v4, %v1526_v5 }
 0x25f   : > { %v1091_v7 = vcombine.low %v970_v2, %v986_v56  ;;  %v1092_v8 = vcombine.high %v970_v2, %v986_v56  ;;  %v2240_v19 = vcombine.low %v5011_v10, %v5017_v25  ;;  %v2241_v34 = vcombine.high %v5011_v10, %v5017_v25 }
 0x260   : > { %v2242_v27 = vcombine.low %v5014_v11, %v5020_v13  ;;  %v2243_v32 = vcombine.high %v5014_v11, %v5020_v13  ;;  %v5039_v44 = vrot.slane %v2312_v16, %v4787_v51  ;;  %v5042_v45 = vrot.slane %v3864_v21, %v4787_v51 }
 0x261   : > { %v1099_v37 = vrot.slane %v1091_v7, %v4787_v51  ;;  %v1106_v15 = vrot.slane %v1092_v8, %v4787_v51  ;;  %v5047_v17 = vrot.slane %v2328_v22, %v4787_v51  ;;  %v5050_v18 = vrot.slane %v3865_v23, %v4787_v51 }
 0x262   : > { %v1290_v9 = vpop.permute.xlu1 %1289  ;;  %v2344_v49 = vcombine.low %v5039_v44, %v5042_v45  ;;  %v2345_v33 = vcombine.high %v5039_v44, %v5042_v45 }
 0x263   : > { %v1107_v2 = vcombine.low %v1083_v14, %v1099_v37  ;;  %v1108_v24 = vcombine.high %v1083_v14, %v1099_v37  ;;  %v1123_v29 = vcombine.low %v1090_v28, %v1106_v15  ;;  %v1124_v26 = vcombine.high %v1090_v28, %v1106_v15 }
 0x264   : > { %v2361_v44 = vcombine.high %v5047_v17, %v5050_v18  ;;  %v2352_v13 = vrot.slane %v2344_v49, %v4792_v58 }
 0x265   : > { %v1115_v39 = vrot.slane %v1107_v2, %v4792_v58  ;;  %v1122_v40 = vrot.slane %v1108_v24, %v4792_v58  ;;  %v1131_v41 = vrot.slane %v1123_v29, %v4792_v58  ;;  %v1138_v43 = vrot.slane %v1124_v26, %v4792_v58 }
 0x266   : > { %v1298_v30 = vpop.permute.xlu1 %1297 }
 0x267   : > { %v1395_v46 = vcombine.low %v4783_v42, %v1298_v30  ;;  %v1396_v47 = vcombine.high %v4783_v42, %v1298_v30  ;;  %v1956_v12 = vcombine.low %v1115_v39, %v1122_v40  ;;  %v3854_v36 = vcombine.high %v1115_v39, %v1122_v40 }
 0x268   : > { %v1972_v48 = vcombine.low %v1131_v41, %v1138_v43  ;;  %v3855_v50 = vcombine.high %v1131_v41, %v1138_v43 }
 0x269   : > { %v1963_v59 = vrot.slane %v1956_v12, %v4787_v51  ;;  %v1971_v60 = vrot.slane %v3854_v36, %v4787_v51  ;;  %v1403_v1 = vrot.slane %v1395_v46, %v4787_v51  ;;  %v1410_v3 = vrot.slane %v1396_v47, %v4787_v51 }
 0x26a   : > { %v1306_v52 = vpop.permute.xlu1 %1305  ;;  %v1979_v35 = vrot.slane %v1972_v48, %v4787_v51  ;;  %v1987_v42 = vrot.slane %v3855_v50, %v4787_v51 }
 0x26b   : > { %v1411_v56 = vcombine.low %v1290_v9, %v1306_v52  ;;  %v1412_v57 = vcombine.high %v1290_v9, %v1306_v52  ;;  %v1988_v6 = vcombine.low %v1963_v59, %v1971_v60  ;;  %v1989_v38 = vcombine.high %v1963_v59, %v1971_v60 }
 0x26c   : > { %v2004_v7 = vcombine.low %v1979_v35, %v1987_v42  ;;  %v2005_v8 = vcombine.high %v1979_v35, %v1987_v42  ;;  %v2360_v35 = vcombine.low %v5047_v17, %v5050_v18 }
 0x26d   : > { %v1419_v4 = vrot.slane %v1411_v56, %v4787_v51  ;;  %v1426_v5 = vrot.slane %v1412_v57, %v4787_v51  ;;  %v1996_v15 = vrot.slane %v1988_v6, %v4792_v58  ;;  %v2003_v16 = vrot.slane %v1989_v38, %v4792_v58 }
 0x26e   : > { %v2012_v21 = vrot.slane %v2004_v7, %v4792_v58  ;;  %v2019_v22 = vrot.slane %v2005_v8, %v4792_v58  ;;  %v1310_v12 = vpop.permute.xlu1 %1309 }
 0x26f   : > { %v1427_v9 = vcombine.low %v1403_v1, %v1419_v4  ;;  %v1428_v14 = vcombine.high %v1403_v1, %v1419_v4  ;;  %v1443_v28 = vcombine.low %v1410_v3, %v1426_v5  ;;  %v1444_v37 = vcombine.high %v1410_v3, %v1426_v5 }
 0x270   : > { %v2020_v26 = vcombine.low %v1996_v15, %v2012_v21  ;;  %v2021_v30 = vcombine.high %v1996_v15, %v2012_v21  ;;  %v2022_v39 = vcombine.low %v2003_v16, %v2019_v22  ;;  %v2023_v40 = vcombine.high %v2003_v16, %v2019_v22 }
 0x271   : > { %v1435_v23 = vrot.slane %v1427_v9, %v4792_v58  ;;  %v1442_v2 = vrot.slane %v1428_v14, %v4792_v58  ;;  %v1451_v24 = vrot.slane %v1443_v28, %v4792_v58  ;;  %v1458_v29 = vrot.slane %v1444_v37, %v4792_v58 }
 0x272   : > { %v2160_v36 = vpack.c.bf16 %v2020_v26, %v1952_v61  ;;  %v2162_v48 = vpack.c.bf16 %v2021_v30, %v1953_v62  ;;  %v2164_v50 = vpack.c.bf16 %v2022_v39, %v1954_v63  ;;  %v2166_v52 = vpack.c.bf16 %v2023_v40, %v1955_v0 }
 0x273   : > { %v2244_v41 = vcombine.low %v1435_v23, %v1442_v2  ;;  %v3862_v43 = vcombine.high %v1435_v23, %v1442_v2  ;;  %v2260_v46 = vcombine.low %v1451_v24, %v1458_v29  ;;  %v3863_v47 = vcombine.high %v1451_v24, %v1458_v29 }
 0x274   : > { %2168 = vst.msk [vmem:[#allocation3] sm:$0xff] %vm1879_vm1, %v2160_v36  ;;  %2170 = vst.msk [vmem:[#allocation3 + $0x10] sm:$0xff] %vm1879_vm1, %v2162_v48  ;;  %v1547_v20 = vcombine.low %v4946_v53, %v1310_v12  ;;  %v1548_v31 = vcombine.high %v4946_v53, %v1310_v12 }
 0x275   : > { %v2251_v56 = vrot.slane %v2244_v41, %v4787_v51  ;;  %v2259_v57 = vrot.slane %v3862_v43, %v4787_v51  ;;  %v2267_v59 = vrot.slane %v2260_v46, %v4787_v51  ;;  %v2275_v61 = vrot.slane %v3863_v47, %v4787_v51  ;;  %2172 = vst.msk [vmem:[#allocation3 + $0x20] sm:$0xff] %vm1879_vm1, %v2164_v50 }
 0x276   : > { %2174 = vst.msk [vmem:[#allocation3 + $0x30] sm:$0xff] %vm1879_vm1, %v2166_v52  ;;  %v1555_v45 = vrot.slane %v1547_v20, %v4787_v51  ;;  %v1562_v42 = vrot.slane %v1548_v31, %v4787_v51 }
 0x277   : > { %v2276_v62 = vcombine.low %v2251_v56, %v2259_v57  ;;  %v2277_v63 = vcombine.high %v2251_v56, %v2259_v57  ;;  %v2292_v0 = vcombine.low %v2267_v59, %v2275_v61  ;;  %v2293_v60 = vcombine.high %v2267_v59, %v2275_v61 }
 0x278   : > { %v1563_v5 = vcombine.low %v4991_v54, %v1555_v45  ;;  %v1564_v6 = vcombine.high %v4991_v54, %v1555_v45  ;;  %v1579_v38 = vcombine.low %v4994_v55, %v1562_v42  ;;  %v1580_v17 = vcombine.high %v4994_v55, %v1562_v42 }
 0x279   : > { %v2284_v1 = vrot.slane %v2276_v62, %v4792_v58  ;;  %v2291_v3 = vrot.slane %v2277_v63, %v4792_v58  ;;  %v2300_v53 = vrot.slane %v2292_v0, %v4792_v58  ;;  %v2307_v4 = vrot.slane %v2293_v60, %v4792_v58 }
 0x27a   : > { %v1571_v14 = vrot.slane %v1563_v5, %v4792_v58  ;;  %v1578_v28 = vrot.slane %v1564_v6, %v4792_v58  ;;  %v1587_v37 = vrot.slane %v1579_v38, %v4792_v58  ;;  %v1594_v15 = vrot.slane %v1580_v17, %v4792_v58 }
 0x27b   : > { %v2308_v18 = vcombine.low %v2284_v1, %v2300_v53  ;;  %v2309_v7 = vcombine.high %v2284_v1, %v2300_v53  ;;  %v2310_v8 = vcombine.low %v2291_v3, %v2307_v4  ;;  %v2311_v9 = vcombine.high %v2291_v3, %v2307_v4 }
 0x27c   : > { %v2380_v22 = vcombine.low %v1571_v14, %v1578_v28  ;;  %v3866_v23 = vcombine.high %v1571_v14, %v1578_v28  ;;  %v2396_v2 = vcombine.low %v1587_v37, %v1594_v15  ;;  %v3867_v24 = vcombine.high %v1587_v37, %v1594_v15 }
 0x27d   : > { %v2448_v54 = vpack.c.bf16 %v2308_v18, %v2240_v19  ;;  %v2450_v55 = vpack.c.bf16 %v2309_v7, %v2241_v34  ;;  %v2452_v16 = vpack.c.bf16 %v2310_v8, %v2242_v27  ;;  %v2454_v21 = vpack.c.bf16 %v2311_v9, %v2243_v32 }
 0x27e   : > { %v2387_v10 = vrot.slane %v2380_v22, %v4787_v51  ;;  %v2395_v25 = vrot.slane %v3866_v23, %v4787_v51  ;;  %v2403_v19 = vrot.slane %v2396_v2, %v4787_v51  ;;  %v2411_v11 = vrot.slane %v3867_v24, %v4787_v51 }
 0x27f   : > { %2456 = vst.msk [vmem:[#allocation4] sm:$0xff] %vm1879_vm1, %v2448_v54  ;;  %2458 = vst.msk [vmem:[#allocation4 + $0x10] sm:$0xff] %vm1879_vm1, %v2450_v55  ;;  %v2359_v34 = vrot.slane %v2345_v33, %v4792_v58  ;;  %v2368_v27 = vrot.slane %v2360_v35, %v4792_v58  ;;  %v2375_v32 = vrot.slane %v2361_v44, %v4792_v58 }
 0x280   : > { %2460 = vst.msk [vmem:[#allocation4 + $0x20] sm:$0xff] %vm1879_vm1, %v2452_v16  ;;  %2462 = vst.msk [vmem:[#allocation4 + $0x30] sm:$0xff] %vm1879_vm1, %v2454_v21  ;;  %v2412_v29 = vcombine.low %v2387_v10, %v2395_v25  ;;  %v2413_v26 = vcombine.high %v2387_v10, %v2395_v25  ;;  %v2428_v30 = vcombine.low %v2403_v19, %v2411_v11 }
 0x281   : > { %v2429_v39 = vcombine.high %v2403_v19, %v2411_v11  ;;  %v2376_v46 = vcombine.low %v2352_v13, %v2368_v27  ;;  %v2377_v47 = vcombine.high %v2352_v13, %v2368_v27  ;;  %v2378_v12 = vcombine.low %v2359_v34, %v2375_v32 }
 0x282   : > { %v2420_v40 = vrot.slane %v2412_v29, %v4792_v58  ;;  %v2427_v41 = vrot.slane %v2413_v26, %v4792_v58  ;;  %v2436_v43 = vrot.slane %v2428_v30, %v4792_v58  ;;  %v2379_v36 = vcombine.high %v2359_v34, %v2375_v32 }
 0x283   : > { %v2443_v51 = vrot.slane %v2429_v39, %v4792_v58 }
 0x284   : > { %v2444_v48 = vcombine.low %v2420_v40, %v2436_v43  ;;  %v2445_v50 = vcombine.high %v2420_v40, %v2436_v43 }
 0x285   : > { %v2446_v52 = vcombine.low %v2427_v41, %v2443_v51  ;;  %v2447_v56 = vcombine.high %v2427_v41, %v2443_v51 }
 0x286   : > { %v2449_v57 = vpack.c.bf16 %v2444_v48, %v2376_v46  ;;  %v2451_v59 = vpack.c.bf16 %v2445_v50, %v2377_v47 }
 0x287   : > { %v2453_v61 = vpack.c.bf16 %v2446_v52, %v2378_v12  ;;  %v2455_v49 = vpack.c.bf16 %v2447_v56, %v2379_v36 }
 0x288   : > { %2457 = vst.msk [vmem:[#allocation4 + $0x8] sm:$0xff] %vm1879_vm1, %v2449_v57  ;;  %2459 = vst.msk [vmem:[#allocation4 + $0x18] sm:$0xff] %vm1879_vm1, %v2451_v59 }
 0x289   : > { %2461 = vst.msk [vmem:[#allocation4 + $0x28] sm:$0xff] %vm1879_vm1, %v2453_v61  ;;  %2463 = vst.msk [vmem:[#allocation4 + $0x38] sm:$0xff] %vm1879_vm1, %v2455_v49 }
 0x28a PF: > { %v2476_v58 = vld [vmem:[#allocation3] sm:$0xff]  ;;  %vm2484_vm2 = vcmask 64512   ;;  %v4436_v20 = vmov 0.0   ;;  %s3868_s19 = sshll.u32 %s4407_s16, 4  ;;  %v2477_v63 = vld [vmem:[#allocation3 + $0x8] sm:$0xff]  ;;  %vm4437_vm3 = vmmov 0  }
 0x28b   : > { %v2480_v33 = vld [vmem:[#allocation3 + $0x20] sm:$0xff]  ;;  %3965 = vmatprep.subr.bf16.mxu1 %v4436_v20  ;;  %v2489_v31 = vsel %vm2484_vm2, %v2476_v58, 0  ;;  %3981 = vmatprep.subr.bf16.mxu0 %v4436_v20  ;;  %s2468_s24 = sshra.s32 %s3868_s19, 4  ;;  %v2481_v0 = vld [vmem:[#allocation3 + $0x28] sm:$0xff]  ;;  %v2492_v60 = vsel %vm2484_vm2, %v2477_v63, 0  ;;  %v2478_v44 = vld [vmem:[#allocation3 + $0x10] sm:$0xff]  ;;  %s2465_s15 = scalar_lea.vmem %s4676_s13, %s3868_s19 }
 0x28c   : > { %v2589_v62 = vsel %vm2484_vm2, %v2480_v33, 0  ;;  %3966 = vmatpush3.bf16.xpose.msra.mxu1 %v2489_v31  ;;  %3969 = vmatprep.mubr.msk.bf16.mxu1 %vm4437_vm3, %v4436_v20  ;;  %s3869_s26 = sshll.u32 %s2468_s24, 3  ;;  %v2592_v35 = vsel %vm2484_vm2, %v2481_v0, 0  ;;  %v2539_v1 = vsel %vm2484_vm2, %v2478_v44, 0  ;;  %v2479_v3 = vld [vmem:[#allocation3 + $0x18] sm:$0xff]  ;;  %v2482_v4 = vld [vmem:[#allocation3 + $0x30] sm:$0xff] }
 0x28d   : > { %3982 = vmatpush3.bf16.xpose.msra.mxu0 %v2589_v62  ;;  %3967 = vmatprep.subr.bf16.mxu1 %v4436_v20  ;;  %s2471_s29 = scalar_lea.vmem [#allocation2], %s3869_s26  ;;  %v2542_v53 = vsel %vm2484_vm2, %v2479_v3, 0  ;;  %v2639_v6 = vsel %vm2484_vm2, %v2482_v4, 0  ;;  %v2483_v38 = vld [vmem:[#allocation3 + $0x38] sm:$0xff]  ;;  %vm2685_vm4 = vcmask 261120   ;;  %s4440_s25 = smov 16  }
 0x28e   : > { %3983 = vmatprep.subr.bf16.mxu0 %v4436_v20  ;;  %3985 = vmatprep.mubr.msk.bf16.mxu0 %vm4437_vm3, %v4436_v20  ;;  %v2472_v45 = vld [vmem:[%s2471_s29] sm:$0xff]  ;;  %v2473_v5 = vld [vmem:[%s2471_s29 + $0x10] sm:$0xff]  ;;  %v2642_v17 = vsel %vm2484_vm2, %v2483_v38, 0  ;;  %s5474_s22 = smov 8   ;;  %s4442_s28 = smov 24   ;;  %vm3268_vm5 = vcmask 130048  }
 0x28f   : > { %v2474_v42 = vld [vmem:[%s2471_s29 + $0x20] sm:$0xff]  ;;  %v2475_v18 = vld [vmem:[%s2471_s29 + $0x30] sm:$0xff]  ;;  %vm3271_vm6 = vcmask 195584   ;;  %s3905_s27 = sshll.u32 %s4407_s16, 1  ;;  %s3906_s12 = sshll.u32 %s4411_s17, 2 }
 0x290   : > { %v2786_v38 = vld [vmem:[#allocation4] sm:$0xff]  ;;  %s5496_s23 = sld [smem:[#allocation29_spill]]  ;;  %s3638_s14 = sadd.s32 %s3906_s12, %s3905_s27 }
 0x291   : > { %s5497_s26 = sld [smem:[#allocation30_spill]]  ;;  %s5498_s29 = sld [smem:[#allocation25_spill]] }
 0x292   : > { %s5499_s20 = sld [smem:[#allocation31_spill]]  ;;  %s3621_s12 = scalar_lea.sflag [#allocation7], %s4667_s11 }
 0x293   : > { %s4443_s19 = smov [#allocation10]  }
 0x294   : > { %3968 = vmatpush3.bf16.xpose.msra.mxu1 %v2492_v60  ;;  %s4321_s24 = sshll.u32 %s4443_s19, 4  ;;  %s4322_s24 = int_to_ptr.vmem [resolvable:$false] %s4321_s24 }
 0x295   : > { %3984 = vmatpush3.bf16.xpose.msra.mxu0 %v2592_v35  ;;  %3973 = vmatprep.subr.bf16.mxu1 %v4436_v20 }
 0x296   : > { %3997 = vmatprep.subr.bf16.mxu0 %v4436_v20 }
 0x297   : > { %p5501_p12 = scmp.ne.s32.totalorder %s5498_s29, 0 }
 0x29b   : > { %3970 = vmatmul.mubr.msk.bf16.vlgmr.msra.gmra.mrb[0].mxu1 %vm2484_vm2, %v2472_v45 }
 0x29c   : > { %3986 = vmatmul.mubr.msk.bf16.vlgmr.msra.gmra.mrb[0].mxu0 %vm2484_vm2, %v2474_v42  ;;  %3974 = vmatpush3.bf16.xpose.msra.mxu1 %v2539_v1 }
 0x29d   : > { %3977 = vmatprep.mubr.msk.bf16.mxu1 %vm4437_vm3, %v4436_v20  ;;  %3975 = vmatprep.subr.bf16.mxu1 %v4436_v20 }
 0x29e   : > { %4001 = vmatprep.mubr.msk.bf16.mxu0 %vm4437_vm3, %v4436_v20  ;;  %3998 = vmatpush3.bf16.msra.mxu0 %v2786_v38 }
 0x29f   : > { %3999 = vmatprep.subr.bf16.mxu0 %v4436_v20 }
 0x2a4   : > { %3976 = vmatpush3.bf16.xpose.msra.mxu1 %v2542_v53 }
 0x2a5   : > { %3989 = vmatprep.subr.bf16.mxu1 %v4436_v20 }
 0x2ab   : > { %3978 = vmatmul.mubr.msk.bf16.vlgmr.msra.gmra.mrb[4].mxu1 %vm2484_vm2, %v2473_v5 }
 0x2ac   : > { %3990 = vmatpush3.bf16.xpose.msra.mxu1 %v2639_v6  ;;  %3993 = vmatprep.mubr.msk.bf16.mxu1 %vm4437_vm3, %v4436_v20 }
 0x2ad   : > { %3991 = vmatprep.subr.bf16.mxu1 %v4436_v20 }
 0x2b4   : > { %3992 = vmatpush3.bf16.xpose.msra.mxu1 %v2642_v17  ;;  %v2787_v17 = vld [vmem:[#allocation4 + $0x8] sm:$0xff] }
 0x2b5   : > { %4005 = vmatprep.subr.bf16.mxu1 %v4436_v20  ;;  %4000 = vmatpush3.bf16.msra.mxu0 %v2787_v17 }
 0x2b6   : > { %4013 = vmatprep.subr.bf16.mxu0 %v4436_v20 }
 0x2bb   : > { %3994 = vmatmul.mubr.msk.bf16.vlgmr.msra.gmra.mrb[8].mxu1 %vm2484_vm2, %v2475_v18 }
 0x2bc   : > { %4009 = vmatprep.mubr.msk.bf16.mxu1 %vm4437_vm3, %v4436_v20 }
 0x36e   : > { %v2528_v7 = vpop.f32.mrb[0].mxu1 }
 0x36f   : > { %v2628_v8 = vpop.f32.mrb[0].mxu0  ;;  %v3971_v9 = vpop.f32.mrb[1].mxu1  ;;  %v2686_v14 = vsel %vm2685_vm4, %v2528_v7, -inf }
 0x370   : > { %v3987_v28 = vpop.f32.mrb[1].mxu0  ;;  %2687 = vmax.xlane.f32.xlu0 %v2686_v14  ;;  %v2531_v37 = vpop.f32.mrb[2].mxu1  ;;  %v2698_v21 = vsel %vm2685_vm4, %v2628_v8, -inf  ;;  %v2788_v14 = vld [vmem:[#allocation4 + $0x10] sm:$0xff] }
 0x371   : > { %v2631_v15 = vpop.f32.mrb[2].mxu0  ;;  %v3972_v54 = vpop.f32.mrb[3].mxu1  ;;  %v2689_v16 = vsel %vm2685_vm4, %v2531_v37, -inf  ;;  %4006 = vmatpush3.bf16.msra.mxu1 %v2788_v14  ;;  %v2789_v28 = vld [vmem:[#allocation4 + $0x18] sm:$0xff] }
 0x372   : > { %v3988_v55 = vpop.f32.mrb[3].mxu0  ;;  %v2701_v19 = vsel %vm2685_vm4, %v2631_v15, -inf  ;;  %4007 = vmatprep.subr.bf16.mxu1 %v4436_v20 }
 0x374   : > { %2690 = vmax.xlane.f32.xlu0 %v2689_v16 }
 0x375   : > { %4008 = vmatpush3.bf16.msra.mxu1 %v2789_v28 }
 0x376   : > { %4021 = vmatprep.subr.bf16.mxu1 %v4436_v20 }
 0x378   : > { %2699 = vmax.xlane.f32.xlu0 %v2698_v21 }
 0x37e   : > { %v2578_v22 = vpop.f32.mrb[4].mxu1 }
 0x37f   : > { %v3979_v23 = vpop.f32.mrb[5].mxu1  ;;  %v2692_v2 = vsel %vm2685_vm4, %v2578_v22, -inf }
 0x380   : > { %2693 = vmax.xlane.f32.xlu1 %v2692_v2  ;;  %v2581_v24 = vpop.f32.mrb[6].mxu1  ;;  %v2790_v2 = vld [vmem:[#allocation4 + $0x20] sm:$0xff] }
 0x381   : > { %v3980_v10 = vpop.f32.mrb[7].mxu1  ;;  %v2695_v25 = vsel %vm2685_vm4, %v2581_v24, -inf }
 0x384   : > { %2696 = vmax.xlane.f32.xlu1 %v2695_v25  ;;  %v2791_v25 = vld [vmem:[#allocation4 + $0x28] sm:$0xff] }
 0x388   : > { %2702 = vmax.xlane.f32.xlu1 %v2701_v19 }
 0x38e   : > { %v2678_v11 = vpop.f32.mrb[8].mxu1 }
 0x38f   : > { %v3995_v13 = vpop.f32.mrb[9].mxu1  ;;  %v2704_v34 = vsel %vm2685_vm4, %v2678_v11, -inf }
 0x390   : > { %2705 = vmax.xlane.f32.xlu0 %v2704_v34  ;;  %v2681_v27 = vpop.f32.mrb[10].mxu1 }
 0x391   : > { %v3996_v32 = vpop.f32.mrb[11].mxu1  ;;  %v2707_v29 = vsel %vm2685_vm4, %v2681_v27, -inf }
 0x392   : > { %2708 = vmax.xlane.f32.xlu1 %v2707_v29 }
 0x3fd   : > { %v2688_v26 = vpop.xlane.xlu0 %2687 }
 0x3fe   : > { %v2710_v30 = vsub.f32 %v2528_v7, %v2688_v26 }
 0x400   : > { %v2718_v39 = vmul.f32 1.442695, %v2710_v30 }
 0x401   : > { %v2691_v40 = vpop.xlane.xlu0 %2690 }
 0x402   : > { %4221 = vpow2.f32 %v2718_v39  ;;  %v2711_v41 = vsub.f32 %v2531_v37, %v2691_v40 }
 0x404   : > { %v2720_v43 = vmul.f32 1.442695, %v2711_v41  ;;  %v2792_v41 = vld [vmem:[#allocation4 + $0x30] sm:$0xff] }
 0x405   : > { %v2700_v51 = vpop.xlane.xlu0 %2699 }
 0x406   : > { %4223 = vpow2.f32 %v2720_v43  ;;  %v2714_v47 = vsub.f32 %v2628_v8, %v2700_v51 }
 0x408   : > { %v2726_v52 = vmul.f32 1.442695, %v2714_v47 }
 0x40c   : > { %v5189_v46 = vpop.eup %4221 }
 0x40d   : > { %v2694_v12 = vpop.xlane.xlu1 %2693  ;;  %v2734_v36 = vsel %vm2685_vm4, %v5189_v46, 0.0 }
 0x40e   : > { %v2712_v48 = vsub.f32 %v2578_v22, %v2694_v12  ;;  %2735 = vadd.xlane.f32.xlu0 %v2734_v36 }
 0x410   : > { %v4224_v50 = vpop.eup %4223  ;;  %v2722_v56 = vmul.f32 1.442695, %v2712_v48 }
 0x411   : > { %v2697_v57 = vpop.xlane.xlu1 %2696  ;;  %v2737_v59 = vsel %vm2685_vm4, %v4224_v50, 0.0 }
 0x412   : > { %4225 = vpow2.f32 %v2722_v56  ;;  %v2713_v61 = vsub.f32 %v2581_v24, %v2697_v57  ;;  %2738 = vadd.xlane.f32.xlu1 %v2737_v59 }
 0x413   : > { %4227 = vpow2.f32 %v2726_v52 }
 0x414   : > { %v2724_v49 = vmul.f32 1.442695, %v2713_v61 }
 0x415   : > { %v2703_v58 = vpop.xlane.xlu1 %2702 }
 0x416   : > { %4229 = vpow2.f32 %v2724_v49  ;;  %v2715_v33 = vsub.f32 %v2631_v15, %v2703_v58 }
 0x418   : > { %v2728_v31 = vmul.f32 1.442695, %v2715_v33 }
 0x41a   : > { %4231 = vpow2.f32 %v2728_v31 }
 0x41c   : > { %v5194_v62 = vpop.eup %4225 }
 0x41d   : > { %v2706_v63 = vpop.xlane.xlu0 %2705  ;;  %v2740_v0 = vsel %vm2685_vm4, %v5194_v62, 0.0  ;;  %v5198_v60 = vpop.eup %4227 }
 0x41e   : > { %v2716_v35 = vsub.f32 %v2678_v11, %v2706_v63  ;;  %2741 = vadd.xlane.f32.xlu0 %v2740_v0  ;;  %v2746_v3 = vsel %vm2685_vm4, %v5198_v60, 0.0  ;;  %v2975_v0 = vlaneseq }
 0x41f   : > { %v2709_v44 = vpop.xlane.xlu1 %2708 }
 0x420   : > { %v5200_v45 = vpop.eup %4229  ;;  %v2730_v42 = vmul.f32 1.442695, %v2716_v35  ;;  %v2717_v1 = vsub.f32 %v2681_v27, %v2709_v44 }
 0x421   : > { %v2743_v53 = vsel %vm2685_vm4, %v5200_v45, 0.0 }
 0x422   : > { %4233 = vpow2.f32 %v2730_v42  ;;  %v2732_v4 = vmul.f32 1.442695, %v2717_v1  ;;  %2747 = vadd.xlane.f32.xlu0 %v2746_v3  ;;  %2744 = vadd.xlane.f32.xlu1 %v2743_v53 }
 0x424   : > { %v5206_v5 = vpop.eup %4231  ;;  %4235 = vpow2.f32 %v2732_v4  ;;  %v2976_v4 = vshrl.u32 %v2975_v0, 7 }
 0x425   : > { %v2749_v6 = vsel %vm2685_vm4, %v5206_v5, 0.0 }
 0x426   : > { %2750 = vadd.xlane.f32.xlu1 %v2749_v6 }
 0x42c   : > { %v5211_v18 = vpop.eup %4233 }
 0x42d   : > { %v2752_v7 = vsel %vm2685_vm4, %v5211_v18, 0.0 }
 0x42e   : > { %v5216_v8 = vpop.eup %4235  ;;  %2753 = vadd.xlane.f32.xlu0 %v2752_v7 }
 0x42f   : > { %v2755_v9 = vsel %vm2685_vm4, %v5216_v8, 0.0 }
 0x430   : > { %2756 = vadd.xlane.f32.xlu1 %v2755_v9 }
 0x49b   : > { %v2736_v37 = vpop.xlane.xlu0 %2735 }
 0x49c   : > { %4237 = vrcp.f32 %v2736_v37 }
 0x49f   : > { %v2739_v15 = vpop.xlane.xlu1 %2738 }
 0x4a0   : > { %4239 = vrcp.f32 %v2739_v15 }
 0x4a6   : > { %v4238_v54 = vpop.eup %4237 }
 0x4a7   : > { %v2766_v55 = vmul.f32 %v4238_v54, %v5189_v46  ;;  %v2793_v46 = vld [vmem:[#allocation4 + $0x38] sm:$0xff] }
 0x4a9   : > { %2774 = vst.msk [vmem:[%s4680_s18] sm:$0xff] %vm2685_vm4, %v2766_v55 }
 0x4aa   : > { %v4240_v16 = vpop.eup %4239 }
 0x4ab   : > { %v2767_v21 = vmul.f32 %v4240_v16, %v4224_v50  ;;  %v2742_v22 = vpop.xlane.xlu0 %2741 }
 0x4ac   : > { %4241 = vrcp.f32 %v2742_v22 }
 0x4ad   : > { %2775 = vst.msk [vmem:[%s4680_s18 + $0x8] sm:$0xff] %vm2685_vm4, %v2767_v21  ;;  %v2782_v23 = vpack.c.bf16 %v2767_v21, %v2766_v55 }
 0x4af   : > { %v2748_v24 = vpop.xlane.xlu0 %2747  ;;  %4002 = vmatmul.mubr.msk.bf16.vlgmr.msra.gmra.mrb[4].mxu0 %vm2685_vm4, %v2782_v23  ;;  %v2745_v10 = vpop.xlane.xlu1 %2744 }
 0x4b0   : > { %4243 = vrcp.f32 %v2748_v24  ;;  %4014 = vmatpush3.bf16.msra.mxu0 %v2790_v2  ;;  %4017 = vmatprep.mubr.msk.bf16.mxu0 %vm4437_vm3, %v4436_v20 }
 0x4b1   : > { %4245 = vrcp.f32 %v2745_v10  ;;  %4015 = vmatprep.subr.bf16.mxu0 %v4436_v20 }
 0x4b3   : > { %v2751_v19 = vpop.xlane.xlu1 %2750 }
 0x4b4   : > { %4247 = vrcp.f32 %v2751_v19  ;;  %4016 = vmatpush3.bf16.msra.mxu0 %v2791_v25 }
 0x4b5   : > { %4029 = vmatprep.subr.bf16.mxu0 %v4436_v20 }
 0x4b6   : > { %v4242_v11 = vpop.eup %4241 }
 0x4b7   : > { %v2768_v13 = vmul.f32 %v4242_v11, %v5194_v62  ;;  %v4438_v62 = vmov 1983009808  }
 0x4b8   : > { %v2973_v63 = vunpack.c.l.s4 %v4438_v62 }
 0x4b9   : > { %2776 = vst.msk [vmem:[%s4680_s18 + $0x10] sm:$0xff] %vm2685_vm4, %v2768_v13 }
 0x4ba   : > { %v4244_v34 = vpop.eup %4243  ;;  %v2974_v53 = vunpack.c.0.s8 %v2973_v63 }
 0x4bb   : > { %v4246_v27 = vpop.eup %4245  ;;  %v2770_v32 = vmul.f32 %v4244_v34, %v5198_v60  ;;  %v2754_v29 = vpop.xlane.xlu0 %2753 }
 0x4bc   : > { %v2769_v26 = vmul.f32 %v4246_v27, %v5200_v45  ;;  %4249 = vrcp.f32 %v2754_v29  ;;  %v2977_v38 = vsub.s32 %v2974_v53, %v2976_v4 }
 0x4bd   : > { %2778 = vst.msk [vmem:[%s4680_s18 + $0x20] sm:$0xff] %vm2685_vm4, %v2770_v32  ;;  %v2757_v30 = vpop.xlane.xlu1 %2756 }
 0x4be   : > { %v4248_v39 = vpop.eup %4247  ;;  %2777 = vst.msk [vmem:[%s4680_s18 + $0x18] sm:$0xff] %vm2685_vm4, %v2769_v26  ;;  %4251 = vrcp.f32 %v2757_v30  ;;  %v2783_v40 = vpack.c.bf16 %v2769_v26, %v2768_v13 }
 0x4bf   : > { %v2771_v43 = vmul.f32 %v4248_v39, %v5206_v5  ;;  %v4439_v5 = vmov 1934713408  }
 0x4c0   : > { %4010 = vmatmul.mubr.msk.bf16.vlgmr.msra.gmra.mrb[12].mxu1 %vm2685_vm4, %v2783_v40  ;;  %v3005_v6 = vunpack.c.l.s4 %v4439_v5 }
 0x4c1   : > { %2779 = vst.msk [vmem:[%s4680_s18 + $0x28] sm:$0xff] %vm2685_vm4, %v2771_v43  ;;  %v2784_v51 = vpack.c.bf16 %v2771_v43, %v2770_v32  ;;  %4022 = vmatpush3.bf16.msra.mxu1 %v2792_v41  ;;  %4025 = vmatprep.mubr.msk.bf16.mxu1 %vm4437_vm3, %v4436_v20 }
 0x4c2   : > { %4023 = vmatprep.subr.bf16.mxu1 %v4436_v20  ;;  %v3006_v17 = vunpack.c.0.s8 %v3005_v6 }
 0x4c3   : > { %4018 = vmatmul.mubr.msk.bf16.vlgmr.msra.gmra.mrb[8].mxu0 %vm2685_vm4, %v2784_v51 }
 0x4c4   : > { %4033 = vmatprep.mubr.msk.bf16.mxu0 %vm4437_vm3, %v4436_v20  ;;  %v5261_v37 = vsub.s32 %v3006_v17, %v2976_v4  ;;  %v4210_v4 = vld [vmem:[#allocation5 + $0x8] sm:$0xff]  }
 0x4c5   : > { %4024 = vmatpush3.bf16.msra.mxu1 %v2793_v46 }
 0x4c6   : > { %v4250_v47 = vpop.eup %4249  ;;  %4037 = vmatprep.subr.bf16.mxu1 %v4436_v20 }
 0x4c7   : > { %v2772_v12 = vmul.f32 %v4250_v47, %v5211_v18 }
 0x4c8   : > { %v4252_v36 = vpop.eup %4251 }
 0x4c9   : > { %2780 = vst.msk [vmem:[%s4680_s18 + $0x30] sm:$0xff] %vm2685_vm4, %v2772_v12  ;;  %v2773_v48 = vmul.f32 %v4252_v36, %v5216_v8 }
 0x4cb   : > { %2781 = vst.msk [vmem:[%s4680_s18 + $0x38] sm:$0xff] %vm2685_vm4, %v2773_v48  ;;  %v2785_v50 = vpack.c.bf16 %v2773_v48, %v2772_v12 }
 0x4cd   : > { %4026 = vmatmul.mubr.msk.bf16.vlgmr.msra.gmra.mrb[16].mxu1 %vm2685_vm4, %v2785_v50 }
 0x4ce   : > { %4041 = vmatprep.mubr.msk.bf16.mxu1 %vm4437_vm3, %v4436_v20 }
 0x582   : > { %v2831_v52 = vpop.f32.mrb[4].mxu0 }
 0x583   : > { %v4003_v56 = vpop.f32.mrb[5].mxu0 }
 0x584   : > { %v2834_v57 = vpop.f32.mrb[6].mxu0 }
 0x585   : > { %v4004_v59 = vpop.f32.mrb[7].mxu0 }
 0x586   : > { %v4209_v59 = vld [vmem:[#allocation5] sm:$0xff]  }
 0x587   : > { %4030 = vmatpush3.bf16.msra.mxu0 %v4209_v59 }
 0x588   : > { %4031 = vmatprep.subr.bf16.mxu0 %v4436_v20 }
 0x58b   : > { %4032 = vmatpush3.bf16.msra.mxu0 %v4210_v4  ;;  %v4215_v4 = vld [vmem:[%s5450_s7 + $0x10] sm:$0xff]  }
 0x58c   : > { %4045 = vmatprep.subr.bf16.mxu0 %v4436_v20 }
 0x593   : > { %v2875_v61 = vpop.f32.mrb[12].mxu1 }
 0x594   : > { %v4011_v49 = vpop.f32.mrb[13].mxu1 }
 0x595   : > { %v2878_v58 = vpop.f32.mrb[14].mxu1 }
 0x596   : > { %v4012_v33 = vpop.f32.mrb[15].mxu1  ;;  %v2919_v31 = vpop.f32.mrb[8].mxu0 }
 0x597   : > { %v2970_v60 = vcombine.low %v2831_v52, %v2919_v31  ;;  %v2971_v35 = vcombine.high %v2831_v52, %v2919_v31  ;;  %v4019_v44 = vpop.f32.mrb[9].mxu0 }
 0x598   : > { %v2922_v45 = vpop.f32.mrb[10].mxu0 }
 0x599   : > { %v3038_v42 = vcombine.low %v2834_v57, %v2922_v45  ;;  %v3039_v1 = vcombine.high %v2834_v57, %v2922_v45  ;;  %v4020_v3 = vpop.f32.mrb[11].mxu0  ;;  %v2978_v14 = vrot.slane %v2970_v60, %v2977_v38  ;;  %v2985_v28 = vrot.slane %v2971_v35, %v2977_v38 }
 0x59b   : > { %v3046_v25 = vrot.slane %v3038_v42, %v2977_v38  ;;  %v3053_v19 = vrot.slane %v3039_v1, %v2977_v38 }
 0x5a0   : > { %v2963_v18 = vpop.f32.mrb[16].mxu1 }
 0x5a1   : > { %v2986_v7 = vcombine.low %v2875_v61, %v2963_v18  ;;  %v2987_v8 = vcombine.high %v2875_v61, %v2963_v18  ;;  %v4027_v9 = vpop.f32.mrb[17].mxu1 }
 0x5a2   : > { %v2966_v15 = vpop.f32.mrb[18].mxu1 }
 0x5a3   : > { %v2994_v54 = vrot.slane %v2986_v7, %v2977_v38  ;;  %v3001_v55 = vrot.slane %v2987_v8, %v2977_v38  ;;  %v3054_v16 = vcombine.low %v2878_v58, %v2966_v15  ;;  %v3055_v21 = vcombine.high %v2878_v58, %v2966_v15  ;;  %v4028_v22 = vpop.f32.mrb[19].mxu1 }
 0x5a5   : > { %v3002_v23 = vcombine.low %v2978_v14, %v2994_v54  ;;  %v3003_v2 = vcombine.high %v2978_v14, %v2994_v54  ;;  %v3018_v24 = vcombine.low %v2985_v28, %v3001_v55  ;;  %v3019_v10 = vcombine.high %v2985_v28, %v3001_v55 }
 0x5a6   : > { %v3062_v11 = vrot.slane %v3054_v16, %v2977_v38  ;;  %v3069_v13 = vrot.slane %v3055_v21, %v2977_v38 }
 0x5a7   : > { %v3010_v34 = vrot.slane %v3002_v23, %v5261_v37  ;;  %v3017_v27 = vrot.slane %v3003_v2, %v5261_v37  ;;  %v3026_v32 = vrot.slane %v3018_v24, %v5261_v37  ;;  %v3033_v29 = vrot.slane %v3019_v10, %v5261_v37 }
 0x5a8   : > { %v3070_v26 = vcombine.low %v3046_v25, %v3062_v11  ;;  %v3071_v30 = vcombine.high %v3046_v25, %v3062_v11  ;;  %v3086_v39 = vcombine.low %v3053_v19, %v3069_v13  ;;  %v3087_v40 = vcombine.high %v3053_v19, %v3069_v13 }
 0x5a9   : > { %v3106_v41 = vcombine.low %v3010_v34, %v3017_v27  ;;  %v3878_v43 = vcombine.high %v3010_v34, %v3017_v27  ;;  %v3122_v51 = vcombine.low %v3026_v32, %v3033_v29  ;;  %v3879_v46 = vcombine.high %v3026_v32, %v3033_v29 }
 0x5aa   : > { %v3078_v47 = vrot.slane %v3070_v26, %v5261_v37  ;;  %v3085_v12 = vrot.slane %v3071_v30, %v5261_v37  ;;  %v3094_v36 = vrot.slane %v3086_v39, %v5261_v37  ;;  %v3101_v48 = vrot.slane %v3087_v40, %v5261_v37 }
 0x5ab   : > { %v3113_v50 = vrot.slane %v3106_v41, %v2977_v38  ;;  %v3121_v52 = vrot.slane %v3878_v43, %v2977_v38  ;;  %v3129_v56 = vrot.slane %v3122_v51, %v2977_v38  ;;  %v3137_v57 = vrot.slane %v3879_v46, %v2977_v38  ;;  %v3882_v51 = vld [vmem:[%s5447_s4] ss:$0 sm:$0xff] }
 0x5ac   : > { %v3174_v61 = vcombine.low %v3078_v47, %v3085_v12  ;;  %v3880_v49 = vcombine.high %v3078_v47, %v3085_v12  ;;  %v3190_v58 = vcombine.low %v3094_v36, %v3101_v48  ;;  %v3881_v33 = vcombine.high %v3094_v36, %v3101_v48  ;;  %v2466_v47 = vld [vmem:[%s2465_s15] sm:$0xff] }
 0x5ad   : > { %v3139_v31 = vcombine.high %v3113_v50, %v3121_v52  ;;  %v3155_v62 = vcombine.high %v3129_v56, %v3137_v57  ;;  %v3138_v63 = vcombine.low %v3113_v50, %v3121_v52  ;;  %v3154_v0 = vcombine.low %v3129_v56, %v3137_v57  ;;  %v2467_v50 = vld [vmem:[%s2465_s15 + $0x8] sm:$0xff] }
 0x5ae   : > { %v3181_v60 = vrot.slane %v3174_v61, %v2977_v38  ;;  %v3189_v35 = vrot.slane %v3880_v49, %v2977_v38  ;;  %v3197_v44 = vrot.slane %v3190_v58, %v2977_v38  ;;  %v3205_v45 = vrot.slane %v3881_v33, %v2977_v38 }
 0x5af   : > { %v3153_v42 = vrot.slane %v3139_v31, %v5261_v37  ;;  %v3169_v1 = vrot.slane %v3155_v62, %v5261_v37  ;;  %v3146_v3 = vrot.slane %v3138_v63, %v5261_v37  ;;  %v3162_v53 = vrot.slane %v3154_v0, %v5261_v37 }
 0x5b0   : > { %v3207_v5 = vcombine.high %v3181_v60, %v3189_v35  ;;  %v3223_v6 = vcombine.high %v3197_v44, %v3205_v45  ;;  %v3206_v17 = vcombine.low %v3181_v60, %v3189_v35  ;;  %v3222_v18 = vcombine.low %v3197_v44, %v3205_v45 }
 0x5b1   : > { %v3172_v7 = vcombine.low %v3153_v42, %v3169_v1  ;;  %v3170_v8 = vcombine.low %v3146_v3, %v3162_v53  ;;  %v3171_v9 = vcombine.high %v3146_v3, %v3162_v53  ;;  %v3173_v14 = vcombine.high %v3153_v42, %v3169_v1  ;;  %v4211_v42 = vld [vmem:[#allocation8] sm:$0xff]   ;;  %v4212_v1 = vld [vmem:[#allocation8 + $0x8] sm:$0xff]   ;;  %v4213_v3 = vld [vmem:[%s5450_s7] sm:$0xff]  }
 0x5b2   : > { %v3221_v38 = vrot.slane %v3207_v5, %v5261_v37  ;;  %v3237_v28 = vrot.slane %v3223_v6, %v5261_v37  ;;  %v3214_v15 = vrot.slane %v3206_v17, %v5261_v37  ;;  %v3230_v54 = vrot.slane %v3222_v18, %v5261_v37  ;;  %4038 = vmatpush3.bf16.msra.mxu1 %v4211_v42  ;;  %v4214_v53 = vld [vmem:[%s5450_s7 + $0x8] sm:$0xff]   ;;  %v4216_v5 = vld [vmem:[%s5450_s7 + $0x18] sm:$0xff]   ;;  %v4217_v6 = vld [vmem:[%s5450_s7 + $0x20] sm:$0xff]  }
 0x5b3   : > { %4039 = vmatprep.subr.bf16.mxu1 %v4436_v20  ;;  %v4218_v17 = vld [vmem:[%s5450_s7 + $0x28] sm:$0xff]  }
 0x5b4   : > { %v3240_v55 = vcombine.low %v3221_v38, %v3237_v28  ;;  %v3239_v16 = vcombine.high %v3214_v15, %v3230_v54  ;;  %v3238_v21 = vcombine.low %v3214_v15, %v3230_v54  ;;  %v3241_v22 = vcombine.high %v3221_v38, %v3237_v28  ;;  %v3886_v54 = vld [vmem:[%s5452_s9] ss:$0 sm:$0xff] }
 0x5b6   : > { %v4199_v23 = vpack.i.bf16 %v3240_v55, %v3172_v7  ;;  %v4194_v2 = vpack.i.bf16 %v3239_v16, %v3171_v9  ;;  %v4204_v24 = vpack.i.bf16 %v3241_v22, %v3173_v14  ;;  %4040 = vmatpush3.bf16.msra.mxu1 %v4212_v1  ;;  %v3887_v22 = vld [vmem:[%s5453_s10] ss:$0 sm:$0xff] }
 0x5b7   : > { %v3901_v1 = vld [vmem:[%s5496_s23] ss:$0 sm:$0xff] }
 0x5b8   : > { %4200 = vrot.lane.b32.xlu1 %v4199_v23, %s4440_s25  ;;  %4195 = vrot.lane.b32.xlu0 %v4194_v2, %s5474_s22  ;;  %s3907_s25 = sshll.u32 %s3638_s14, 7  ;;  %s5500_s22 = smov %s5499_s20 }
 0x5b9   : > { %s5360_s23 = scalar_lea.hbm %s5499_s20, %s3907_s25 }
 0x5bc   : > { %4205 = vrot.lane.b32.xlu1 %v4204_v24, %s4442_s28  ;;  %s3641_s28 = sshll.u32 %s4678_s21, 4  ;;  %s5364_s28 = int_to_ptr.vmem [resolvable:$true] %s3641_s28 }
 0x5bd   : > { %s4317_s14 = scalar_lea.vmem %s5364_s28, 256  ;;  %p4324_p5 = scmp.lt.s32.totalorder %s5364_s28, %s4322_s24 }
 0x5be   : > { %p4318_p10 = scmp.ne.s32.totalorder %s5364_s28, %s4317_s14 }
 0x5c0   : > { %p4319_p1 = pnand %p4318_p10, %p5501_p12 }
 0x5c2   : > { %p4320_p4 = pneg %p4319_p1 }
 0x62a   : > { %v4201_v10 = vpop.permute.xlu1 %4200  ;;  %v4196_v25 = vpop.permute.xlu0 %4195 }
 0x62b   : > { %v4198_v19 = vunpack.i.h.bf16 %v4196_v25  ;;  %v4197_v37 = vunpack.i.l.bf16 %v4196_v25  ;;  %v4203_v11 = vunpack.i.h.bf16 %v4201_v10  ;;  %v4202_v13 = vunpack.i.l.bf16 %v4201_v10  ;;  %v4219_v25 = vld [vmem:[%s5450_s7 + $0x30] sm:$0xff]  }
 0x62d   : > { %v3266_v34 = vsel %vm2484_vm2, %v3170_v8, %v4197_v37  ;;  %v3267_v27 = vsel %vm2484_vm2, %v3238_v21, %v4198_v19  ;;  %v4220_v19 = vld [vmem:[%s5450_s7 + $0x38] sm:$0xff]   ;;  %v3888_v37 = vld [vmem:[%s5449_s6] ss:$0 sm:$0xff] }
 0x62e   : > { %v4206_v32 = vpop.permute.xlu1 %4205  ;;  %v3269_v30 = vsel %vm3268_vm5, %v3266_v34, %v4202_v13  ;;  %v3270_v39 = vsel %vm3268_vm5, %v3267_v27, %v4203_v11 }
 0x62f   : > { %v4208_v29 = vunpack.i.h.bf16 %v4206_v32  ;;  %v4207_v26 = vunpack.i.l.bf16 %v4206_v32 }
 0x631   : > { %v3272_v40 = vsel %vm3271_vm6, %v3269_v30, %v4207_v26  ;;  %v3273_v41 = vsel %vm3271_vm6, %v3270_v39, %v4208_v29 }
 0x632   : > { %v3274_v43 = vpack.c.bf16 %v3273_v41, %v3272_v40 }
 0x634   : > { %4034 = vmatmul.mubr.msk.bf16.vlgmr.msra.gmra.mrb[12].mxu0 %vm2685_vm4, %v3274_v43 }
 0x635   : > { %4061 = vmatprep.mubr.msk.bf16.mxu0 %vm4437_vm3, %v4436_v20  ;;  %4046 = vmatpush3.bf16.msra.mxu0 %v4213_v3 }
 0x636   : > { %4047 = vmatprep.subr.bf16.mxu0 %v4436_v20 }
 0x639   : > { %4048 = vmatpush3.bf16.msra.mxu0 %v4214_v53 }
 0x63a   : > { %4049 = vmatprep.subr.bf16.mxu0 %v4436_v20 }
 0x63d   : > { %4050 = vmatpush3.bf16.msra.mxu0 %v4215_v4  ;;  %v3902_v4 = vld [vmem:[%s5497_s26] ss:$0 sm:$0xff]  ;;  %s4323_s26 = scalar_lea.vmem %s4322_s24, 512 }
 0x63e   : > { %4051 = vmatprep.subr.bf16.mxu0 %v4436_v20  ;;  %p4325_p6 = scmp.lt.s32.totalorder %s4323_s26, %s4317_s14 }
 0x640   : > { %p4326_p7 = por %p4325_p6, %p4324_p5 }
 0x641   : > { %4052 = vmatpush3.bf16.msra.mxu0 %v4216_v5 }
 0x642   : > { %4053 = vmatprep.subr.bf16.mxu0 %v4436_v20  ;;  %p4327_p9 = pnand %p4326_p7, %p4320_p4 }
 0x645   : > { %4054 = vmatpush3.bf16.msra.mxu0 %v4217_v6 }
 0x646   : > { %4055 = vmatprep.subr.bf16.mxu0 %v4436_v20 }
 0x649   : > { %4056 = vmatpush3.bf16.msra.mxu0 %v4218_v17 }
 0x64a   : > { %4057 = vmatprep.subr.bf16.mxu0 %v4436_v20 }
 0x64d   : > { %4058 = vmatpush3.bf16.msra.mxu0 %v4219_v25 }
 0x64e   : > { %4059 = vmatprep.subr.bf16.mxu0 %v4436_v20  ;;  %v3892_v20 = vld [vmem:[%s5451_s8] ss:$0 sm:$0xff] }
 0x651   : > { %4060 = vmatpush3.bf16.msra.mxu0 %v4220_v19 }
 0x707   : > { %v3335_v46 = vpop.f32.mrb[12].mxu0 }
 0x708   : > { %v3336_v12 = vadd.f32 %v3882_v51, %v3335_v46  ;;  %v4035_v36 = vpop.f32.mrb[13].mxu0 }
 0x709   : > { %v3338_v48 = vpop.f32.mrb[14].mxu0 }
 0x70a   : > { %v3339_v52 = vadd.f32 %v3882_v51, %v3338_v48  ;;  %v4036_v56 = vpop.f32.mrb[15].mxu0  ;;  %v3342_v57 = vadd.f32 %v3336_v12, %v2466_v47 }
 0x70c   : > { %v3346_v59 = vsel %vm2685_vm4, %v3342_v57, 0.0  ;;  %v3343_v61 = vadd.f32 %v3339_v52, %v2467_v50 }
 0x70d   : > { %3347 = vadd.xlane.f32.xlu1 %v3346_v59 }
 0x70e   : > { %v3349_v49 = vsel %vm2685_vm4, %v3343_v61, 0.0 }
 0x70f   : > { %3350 = vadd.xlane.f32.xlu0 %v3349_v49 }
 0x79a   : > { %v3348_v58 = vpop.xlane.xlu1 %3347 }
 0x79b   : > { %v3353_v33 = vmul.f32 0.03125, %v3348_v58 }
 0x79c   : > { %v3351_v31 = vpop.xlane.xlu0 %3350 }
 0x79d   : > { %v3355_v62 = vsub.f32 %v3342_v57, %v3353_v33  ;;  %v3354_v63 = vmul.f32 0.03125, %v3351_v31 }
 0x79f   : > { %v3356_v0 = vsub.f32 %v3343_v61, %v3354_v63  ;;  %v3357_v60 = vmul.f32 %v3355_v62, %v3355_v62 }
 0x7a1   : > { %v3359_v35 = vsel %vm2685_vm4, %v3357_v60, 0.0  ;;  %v3358_v44 = vmul.f32 %v3356_v0, %v3356_v0 }
 0x7a2   : > { %3360 = vadd.xlane.f32.xlu0 %v3359_v35 }
 0x7a3   : > { %v3362_v45 = vsel %vm2685_vm4, %v3358_v44, 0.0 }
 0x7a6   : > { %3363 = vadd.xlane.f32.xlu0 %v3362_v45 }
 0x82f   : > { %v3361_v18 = vpop.xlane.xlu0 %3360 }
 0x830   : > { %v3365_v7 = vmul.f32 0.03125, %v3361_v18 }
 0x832   : > { %v3367_v8 = vadd.f32 1e-05, %v3365_v7 }
 0x833   : > { %v3364_v9 = vpop.xlane.xlu0 %3363 }
 0x834   : > { %4253 = vrsqrt.f32 %v3367_v8  ;;  %v3366_v14 = vmul.f32 0.03125, %v3364_v9 }
 0x836   : > { %v3368_v38 = vadd.f32 1e-05, %v3366_v14 }
 0x838   : > { %4255 = vrsqrt.f32 %v3368_v38 }
 0x83e   : > { %v4254_v28 = vpop.eup %4253 }
 0x83f   : > { %v3371_v15 = vmul.f32 %v4254_v28, %v3355_v62 }
 0x841   : > { %v3379_v16 = vmul.f32 %v3886_v54, %v3371_v15 }
 0x842   : > { %v4256_v55 = vpop.eup %4255 }
 0x843   : > { %v3372_v21 = vmul.f32 %v4256_v55, %v3356_v0  ;;  %v3387_v2 = vadd.f32 %v3887_v22, %v3379_v16 }
 0x845   : > { %v3380_v23 = vmul.f32 %v3886_v54, %v3372_v21 }
 0x847   : > { %v3388_v24 = vadd.f32 %v3887_v22, %v3380_v23 }
 0x849   : > { %v3389_v10 = vpack.c.bf16 %v3388_v24, %v3387_v2 }
 0x84b   : > { %4042 = vmatmul.mubr.msk.bf16.vlgmr.msra.gmra.mrb[20].mxu1 %vm2685_vm4, %v3389_v10 }
 0x91e   : > { %v3450_v11 = vpop.f32.mrb[20].mxu1 }
 0x91f   : > { %v3451_v13 = vadd.f32 %v3888_v37, %v3450_v11  ;;  %v4043_v34 = vpop.f32.mrb[21].mxu1 }
 0x920   : > { %v3453_v27 = vpop.f32.mrb[22].mxu1 }
 0x921   : > { %v3454_v32 = vadd.f32 %v3888_v37, %v3453_v27  ;;  %v4044_v29 = vpop.f32.mrb[23].mxu1  ;;  %v3457_v26 = vmax.f32 %v3451_v13, 0.0 }
 0x923   : > { %v3458_v30 = vmax.f32 %v3454_v32, 0.0 }
 0x925   : > { %v3459_v39 = vpack.c.bf16 %v3458_v30, %v3457_v26 }
 0x927   : > { %4062 = vmatmul.mubr.bf16.vlgmr.msra.gmra.mrb[16].mxu0 %v3459_v39 }
 0x9fa   : > { %v3565_v40 = vpop.f32.mrb[16].mxu0 }
 0x9fb   : > { %v3566_v41 = vadd.f32 %v3892_v20, %v3565_v40  ;;  %v4063_v43 = vpop.f32.mrb[17].mxu0 }
 0x9fc   : > { %v3568_v51 = vpop.f32.mrb[18].mxu0 }
 0x9fd   : > { %v3569_v46 = vadd.f32 %v3892_v20, %v3568_v51  ;;  %v4064_v47 = vpop.f32.mrb[19].mxu0  ;;  %v3572_v12 = vadd.f32 %v3566_v41, %v3387_v2 }
 0x9ff   : > { %v3576_v36 = vsel %vm2685_vm4, %v3572_v12, 0.0  ;;  %v3573_v48 = vadd.f32 %v3569_v46, %v3388_v24 }
 0xa00   : > { %3577 = vadd.xlane.f32.xlu1 %v3576_v36 }
 0xa01   : > { %v3579_v50 = vsel %vm2685_vm4, %v3573_v48, 0.0 }
 0xa02   : > { %3580 = vadd.xlane.f32.xlu0 %v3579_v50 }
 0xa8d   : > { %v3578_v52 = vpop.xlane.xlu1 %3577 }
 0xa8e   : > { %v3582_v56 = vmul.f32 0.03125, %v3578_v52 }
 0xa8f   : > { %v3581_v57 = vpop.xlane.xlu0 %3580 }
 0xa90   : > { %v3584_v59 = vsub.f32 %v3572_v12, %v3582_v56  ;;  %v3583_v61 = vmul.f32 0.03125, %v3581_v57 }
 0xa92   : > { %v3585_v49 = vsub.f32 %v3573_v48, %v3583_v61  ;;  %v3586_v58 = vmul.f32 %v3584_v59, %v3584_v59 }
 0xa94   : > { %v3588_v33 = vsel %vm2685_vm4, %v3586_v58, 0.0  ;;  %v3587_v31 = vmul.f32 %v3585_v49, %v3585_v49 }
 0xa95   : > { %3589 = vadd.xlane.f32.xlu1 %v3588_v33 }
 0xa96   : > { %v3591_v62 = vsel %vm2685_vm4, %v3587_v31, 0.0 }
 0xa97   : > { %3592 = vadd.xlane.f32.xlu0 %v3591_v62 }
 0xb22   : > { %v3590_v63 = vpop.xlane.xlu1 %3589 }
 0xb23   : > { %v3594_v0 = vmul.f32 0.03125, %v3590_v63 }
 0xb24   : > { %v3593_v60 = vpop.xlane.xlu0 %3592 }
 0xb25   : > { %v3596_v35 = vadd.f32 1e-05, %v3594_v0  ;;  %v3595_v44 = vmul.f32 0.03125, %v3593_v60 }
 0xb27   : > { %4257 = vrsqrt.f32 %v3596_v35  ;;  %v3597_v45 = vadd.f32 1e-05, %v3595_v44 }
 0xb29   : > { %4259 = vrsqrt.f32 %v3597_v45 }
 0xb31   : > { %v4258_v42 = vpop.eup %4257 }
 0xb32   : > { %v3600_v3 = vmul.f32 %v4258_v42, %v3584_v59 }
 0xb33   : > { %v4260_v53 = vpop.eup %4259 }
 0xb34   : > { %v3608_v5 = vmul.f32 %v3901_v1, %v3600_v3  ;;  %v3601_v6 = vmul.f32 %v4260_v53, %v3585_v49 }
 0xb36   : > { %v3609_v17 = vmul.f32 %v3901_v1, %v3601_v6  ;;  %v3616_v18 = vadd.f32 %v3902_v4, %v3608_v5 }
 0xb38   : > { %v3617_v7 = vadd.f32 %v3902_v4, %v3609_v17  ;;  %3618 = vst.msk [vmem:[%s4678_s21] sm:$0xff] %vm2685_vm4, %v3616_v18 }
 0xb3a   : > { %3619 = vst.msk [vmem:[%s4678_s21 + $0x8] sm:$0xff] %vm2685_vm4, %v3617_v7 }
 0xb3b   : > { %4330 = shalt.err (!%p4327_p9)
}
 0xb3c   : > { %s4331_s21 = scalar_lea.hbm %s5360_s23, 256  ;;  %s4335_s13 = scalar_lea.hbm %s5500_s22, 1024 }
 0xb3d   : > { %p4332_p11 = scmp.ne.s32.totalorder %s5360_s23, %s4331_s21  ;;  %p4336_p8 = scmp.lt.u32.totalorder %s5360_s23, %s5500_s22 }
 0xb3e   : > { %p4337_p0 = scmp.lt.u32.totalorder %s4335_s13, %s4331_s21  ;;  %p4339_p10 = scmp.lt.u32.totalorder %s4331_s21, %s5360_s23 }
 0xb3f   : > { %p4333_p13 = pnand %p4332_p11, %p5501_p12 }
 0xb40   : > { %p4338_p2 = por %p4337_p0, %p4336_p8 }
 0xb41   : > { %p4334_p3 = pneg %p4333_p13 }
 0xb42   : > { %p4340_p1 = por %p4339_p10, %p4338_p2 }
 0xb44   : > { %p4341_p4 = pnand %p4340_p1, %p4334_p3 }
 0xb46   : > { %4344 = shalt.err (!%p4341_p4)
}
 0xb47   : > { %s4444_s14 = smov 128   ;;  %s5502_s24 = smov 8  }
 0xb48   : > { %4073 = dma.vmem_to_hbm [thread:$0]  (%p5501_p12), %s5364_s28, 256, %s5360_s23, %s3621_s12, %s4444_s14, %s4444_s14, %s5502_s24  }
 0xb49   : > { %s3626_s26 = scalar_lea.sflag [#allocation12], %s4667_s11 }
 0xb4a   : > { %s3909_s21 = sshll.u32 %s4411_s17, 4  ;;  %s3675_s25 = sshll.u32 %s4680_s18, 4  ;;  %s3676_s25 = int_to_ptr.vmem [resolvable:$true] %s3675_s25 }
 0xb4b   : > { %s3656_s15 = sadd.s32 %s3909_s21, %s3905_s27  ;;  %s5503_s28 = sld [smem:[#allocation32_spill]] }
 0xb4c   : > { %s3910_s13 = sshll.u32 %s3656_s15, 7  ;;  %s4445_s23 = smov 256  }
 0xb4d   : > { %4074 = sst [smem:[#allocation14]] (%p5501_p12), %s4445_s23  ;;  %s4446_s12 = smov 512  }
 0xb4e   : > { %4075 = sst [smem:[#allocation14 + $0x1]] (%p5501_p12), %s4446_s12  ;;  %s4447_s14 = smov 2  }
 0xb4f   : > { %4076 = sst [smem:[#allocation14 + $0x2]] (%p5501_p12), %s4447_s14  ;;  %s4448_s17 = smov 128  }
 0xb50   : > { %4077 = sst [smem:[#allocation14 + $0x3]] (%p5501_p12), %s4448_s17  ;;  %s4449_s16 = smov 8  }
 0xb51   : > { %s3658_s11 = scalar_lea.hbm %s5503_s28, %s3910_s13  ;;  %4078 = sst [smem:[#allocation14 + $0x4]] (%p5501_p12), %s4448_s17 }
 0xb52   : > { %4079 = sst [smem:[#allocation14 + $0x5]] (%p5501_p12), %s4449_s16  ;;  %s4450_s18 = smov [#allocation13]  }
 0xb53   : > { %s4451_s27 = smov 0  }
 0xb54   : > { %4080 = dma.general (%p5501_p12), %s3676_s25, 1024, %s3658_s11, %s3626_s26, %s4450_s18, [#allocation14], %s4451_s27, 0  }
 0xb55 PF: > { %s5504_s24 = sld [smem:[#allocation23_spill]]  ;;  %s5505_s21 = sld [smem:[#allocation19_spill]] }
 0xb56   : > { %s5506_s15 = sld [smem:[#allocation27_spill]] }
 0xb5b   : > { %p4101_p5 = scmp.ge.s32.totalorder %s5504_s24, 2  ;;  %s3703_s13 = sand.u32 1, %s5505_s21  }
 0xb5c   : > { %p5507_p6 = scmp.ne.s32.totalorder %s5506_s15, 0  ;;  %s3704_s20 = scalar_lea.sflag [#allocation7], %s3703_s13 }
 0xb5e   : > { %p4091_p7 = pnand %p4101_p5, %p5507_p6 }
 0xb60   : > { %4386 = dma.done.wait (!%p4091_p7), %s3704_s20, 256  }
 0xb61   : > { %4388 = vsyncadd (!%p4091_p7), %s3704_s20, 4294967040  ;;  %s3713_s19 = scalar_lea.sflag [#allocation12], %s3703_s13 }
 0xb62   : > { %4390 = dma.done.wait (!%p4091_p7), %s3713_s19, 1024  }
 0xb63   : > { %4392 = vsyncadd (!%p4091_p7), %s3713_s19, 4294966272  ;;  %s33_s20 = sadd.s32 1, %s5504_s24   ;;  %s5508_s28 = sld [smem:[#allocation20_spill]] }
 0xb64   : > { %p30_p9 = scmp.ge.s32.totalorder %s33_s20, 6   ;;  %s5509_s15 = sld [smem:[#allocation28_spill]] }
 0xb65   : > { %s5510_s16 = sld [smem:[#allocation21_spill]]  ;;  %s5511_s17 = sld [smem:[#allocation22_spill]] }
 0xb66   : > { %s5512_s18 = sld [smem:[#allocation24_spill]]  ;;  %s5513_s19 = sld [smem:[#allocation26_spill]] }
 0xb67   : > { %s5514_s29 = smov %s4399_s30  ;;  %32 = sbr.rel (!%p30_p9) target bundleno = 14 (0xe), region = 144 }
 0xb69   : > { %s5515_s30 = smov %s5508_s28 }
 0xb6e   :  { %3718 = vsyncpa [#allocation6], 1 }
 0xb6f   :  { %3720 = vsyncpa [#allocation6 + $0x1], 1 }
 0xb70   :  { %3721 = vsyncpa [#allocation9], 1 }
 0xb71   :  { %3722 = vsyncpa [#allocation7], 1 }
 0xb72   :  { %3724 = vsyncpa [#allocation7 + $0x1], 1 }
 0xb73   :  { %3725 = vsyncpa [#allocation12], 1 }
 0xb74   :  { %3727 = vsyncpa [#allocation12 + $0x1], 1 }

</bundles_post_ra>
